<compile_context>
chip_gen: v7x
topology: tpu7x:2x2x1
jax: 0.10.0
libtpu: 0.0.40
codegen_flags: <defaults>
</compile_context>

<pallas_src>
import functools
import math

import jax
import jax.numpy as jnp
from jax import lax
from jax.experimental import pallas as pl
from jax.experimental.pallas import tpu as pltpu

# ---------------- configuration (small synthetic RoBERTa) ----------------
B = 2            # batch (per tower)
L = 8            # sequence length
H = 32           # hidden size
NUM_HEADS = 2
HEAD_DIM = H // NUM_HEADS
FFN = 64
NUM_LAYERS = 2
VOCAB = 100
PAD_POS = 1      # RoBERTa padding_idx for position embeddings
LN_EPS = 1e-12
TEMPERATURE = 0.05

N2 = B * L                      # rows per tower half
NROWS = NUM_HEADS * N2          # head-folded rows per tower half
VEC_ROWS = 2 + 8 * NUM_LAYERS   # packed small-vector rows
VEC_W = 3 * H                   # packed small-vector width (>= FFN, >= 3H)

_VMEM = pl.BlockSpec(memory_space=pltpu.MemorySpace.VMEM)


# ---------------- in-kernel helpers (f32 VPU/EUP math) ----------------
def _layer_norm(x, g, b):
    mu = jnp.mean(x, axis=-1, keepdims=True)
    var = jnp.mean(jnp.square(x - mu), axis=-1, keepdims=True)
    return (x - mu) * lax.rsqrt(var + LN_EPS) * g + b


def _softmax_lastdim(s):
    m = jnp.max(s, axis=-1, keepdims=True)
    e = jnp.exp(s - m)
    # reciprocal on the EUP slot instead of a VALU divide
    return e * pl.reciprocal(jnp.sum(e, axis=-1, keepdims=True), approx=True)


# ---------------- encoder kernel (one grid step = one tower half) ----------------
def encoder_kernel(x_ref, bias_ref, poolw_ref, vecs_ref,
                   wqkv_ref, wo_ref, w1_ref, w2_ref, emb_ref):
    f32 = jnp.float32
    bf16 = jnp.bfloat16

    x = x_ref[0]                     # (N2, H) f32 activations, kept 2-D throughout
    bias = bias_ref[0]               # (NROWS, NROWS) f32, built once, reused per layer
    pool_w = poolw_ref[0]            # (B, N2) f32 pooling weights (mask/denom folded)
    vecs = vecs_ref[...]             # (VEC_ROWS, VEC_W) packed biases + LN params

    scale = 1.0 / math.sqrt(HEAD_DIM)

    # embedding LayerNorm
    x = _layer_norm(x, vecs[0:1, :H], vecs[1:2, :H])

    for layer in range(NUM_LAYERS):
        base = 2 + layer * 8
        wqkv = wqkv_ref[layer]                       # (H, 3H)  bf16
        wo = wo_ref[layer]                           # (H, H)   bf16
        w1 = w1_ref[layer]                           # (H, FFN) bf16
        w2 = w2_ref[layer]                           # (FFN, H) bf16
        bqkv = vecs[base + 0:base + 1, :3 * H]
        bo = vecs[base + 1:base + 2, :H]
        ln1g = vecs[base + 2:base + 3, :H]
        ln1b = vecs[base + 3:base + 4, :H]
        b1 = vecs[base + 4:base + 5, :FFN]
        b2 = vecs[base + 5:base + 6, :H]
        ln2g = vecs[base + 6:base + 7, :H]
        ln2b = vecs[base + 7:base + 8, :H]

        # fused QKV projection: one bf16 MXU matmul, f32 accumulate
        qkv = jnp.dot(x.astype(bf16), wqkv, preferred_element_type=f32) + bqkv   # (N2, 3H)

        # fold heads into the row axis -> (NROWS, HEAD_DIM); the block-diagonal
        # additive bias keeps attention within (head, example) blocks, so one
        # score matmul + one context matmul per layer replaces the head loop.
        q = jnp.concatenate([qkv[:, h * HEAD_DIM:(h + 1) * HEAD_DIM]
                             for h in range(NUM_HEADS)], axis=0)
        k = jnp.concatenate([qkv[:, H + h * HEAD_DIM:H + (h + 1) * HEAD_DIM]
                             for h in range(NUM_HEADS)], axis=0)
        v = jnp.concatenate([qkv[:, 2 * H + h * HEAD_DIM:2 * H + (h + 1) * HEAD_DIM]
                             for h in range(NUM_HEADS)], axis=0)

        s = lax.dot_general((q * scale).astype(bf16), k.astype(bf16),
                            (((1,), (1,)), ((), ())),
                            preferred_element_type=f32) + bias                   # (NROWS, NROWS)
        p = _softmax_lastdim(s)                                                  # f32
        ctx = jnp.dot(p.astype(bf16), v.astype(bf16),
                      preferred_element_type=f32)                                # (NROWS, HEAD_DIM)

        # re-assemble heads along lanes and apply ONE (H,H) output projection
        ctx2 = jnp.concatenate([ctx[h * N2:(h + 1) * N2, :]
                                for h in range(NUM_HEADS)], axis=-1)             # (N2, H)
        attn = jnp.dot(ctx2.astype(bf16), wo, preferred_element_type=f32) + bo
        h1 = _layer_norm(x + attn, ln1g, ln1b)

        ff = jnp.dot(h1.astype(bf16), w1, preferred_element_type=f32) + b1
        # TODO(synk): HF RoBERTa uses exact erf-GELU; tanh approximation used here.
        ff = jax.nn.gelu(ff, approximate=True)
        ff = jnp.dot(ff.astype(bf16), w2, preferred_element_type=f32) + b2
        x = _layer_norm(h1 + ff, ln2g, ln2b)

    # masked mean pooling as one tiny matmul, then L2-normalize (F.normalize eps=1e-12)
    pooled = jnp.dot(pool_w, x, preferred_element_type=f32)                      # (B, H)
    nrm = jnp.sqrt(jnp.sum(pooled * pooled, axis=-1, keepdims=True))
    emb_ref[0] = pooled / jnp.maximum(nrm, 1e-12)


# ---------------- tiny scores + cross-entropy kernel ----------------
def score_loss_kernel(emb_ref, out_ref):
    emb = emb_ref[...]                                       # (2, B, H)
    code = emb[0]
    nl = emb[1]
    inv_t = 1.0 / TEMPERATURE
    scores = lax.dot_general(nl, code, (((1,), (1,)), ((), ())),
                             preferred_element_type=jnp.float32) * inv_t          # (B, B)
    diag = jnp.sum(nl * code, axis=-1, keepdims=True) * inv_t                     # (B, 1)
    mx = jnp.max(scores, axis=-1, keepdims=True)
    lse = mx + jnp.log(jnp.sum(jnp.exp(scores - mx), axis=-1, keepdims=True))
    loss = jnp.sum(lse - diag, axis=0, keepdims=True) * (1.0 / B)                 # (1, 1)
    # pack scores + loss into one lane buffer -> single output DMA
    out_ref[...] = jnp.concatenate([scores, jnp.broadcast_to(loss, (B, 1))], axis=-1)


# ---------------- Pallas wrappers ----------------
def _encode(x2, attn_bias, pool_w, params):
    n_tower = x2.shape[0]   # 2 ([code ; nl])
    return pl.pallas_call(
        encoder_kernel,
        out_shape=jax.ShapeDtypeStruct((n_tower, B, H), jnp.float32),
        grid=(n_tower,),
        in_specs=[
            pl.BlockSpec((1, N2, H), lambda i: (i, 0, 0)),
            pl.BlockSpec((1, NROWS, NROWS), lambda i: (i, 0, 0)),
            pl.BlockSpec((1, B, N2), lambda i: (i, 0, 0)),
            # weights / packed vectors: constant block index -> fetched once,
            # kept resident across grid steps.
            pl.BlockSpec((VEC_ROWS, VEC_W), lambda i: (0, 0)),
            pl.BlockSpec((NUM_LAYERS, H, 3 * H), lambda i: (0, 0, 0)),
            pl.BlockSpec((NUM_LAYERS, H, H), lambda i: (0, 0, 0)),
            pl.BlockSpec((NUM_LAYERS, H, FFN), lambda i: (0, 0, 0)),
            pl.BlockSpec((NUM_LAYERS, FFN, H), lambda i: (0, 0, 0)),
        ],
        out_specs=pl.BlockSpec((1, B, H), lambda i: (i, 0, 0)),
        compiler_params=pltpu.CompilerParams(
            dimension_semantics=("parallel",)),     # v7x: one tower per TensorCore
    )(x2, attn_bias, pool_w, params['vecs'],
      params['wqkv'], params['wo'], params['w1'], params['w2'])


def _scores_and_loss(emb):
    packed = pl.pallas_call(
        score_loss_kernel,
        out_shape=jax.ShapeDtypeStruct((B, B + 1), jnp.float32),
        in_specs=[_VMEM],
        out_specs=_VMEM,
    )(emb)
    return packed[:, :B], packed[0, B]


# ---------------- model (glue in plain JAX, all under one jit) ----------------
@functools.partial(jax.jit, static_argnames=('return_embeddings',))
def codebert_contrastive_forward(params, code_ids, code_mask, nl_ids, nl_mask,
                                 return_embeddings=False):
    ids = jnp.stack([code_ids, nl_ids], axis=0)                  # (2, B, L)
    mask = jnp.stack([code_mask, nl_mask], axis=0)               # (2, B, L)
    maskf = mask.astype(jnp.float32)

    # RoBERTa padding-offset position ids (create_position_ids_from_input_ids)
    pos_ids = jnp.cumsum(mask, axis=-1) * mask + PAD_POS         # padded tokens -> PAD_POS

    # embedding-table gathers kept in plain JAX (fused by XLA under this jit)
    x = (params['word_emb'][ids]
         + params['pos_emb'][pos_ids]
         + params['type_emb'][0][None, None, None, :])           # (2, B, L, H)
    x2 = x.reshape(2, N2, H)                                     # 2-D rows, no per-layer reshapes

    # block-diagonal additive attention bias over the head-folded row axis,
    # materialized ONCE here and reused by every layer inside the kernel.
    ex = jnp.repeat(jnp.arange(B), L)                            # (N2,)
    same_ex = ex[:, None] == ex[None, :]                         # (N2, N2)
    allow = same_ex[None] & (mask.reshape(2, 1, N2) > 0)         # (2, N2, N2)
    head_id = jnp.repeat(jnp.arange(NUM_HEADS), N2)              # (NROWS,)
    same_head = head_id[:, None] == head_id[None, :]             # (NROWS, NROWS)
    attn_bias = jnp.where(
        jnp.tile(allow, (1, NUM_HEADS, NUM_HEADS)) & same_head[None],
        0.0, -1e9).astype(jnp.float32)                           # (2, NROWS, NROWS)

    # masked-mean pooling folded into (B, N2) matmul weights (clamp(denom, 1e-9))
    denom = jnp.maximum(jnp.sum(maskf, axis=-1, keepdims=True), 1e-9)   # (2, B, 1)
    pw = maskf / denom                                            # (2, B, L)
    pool_w = (jnp.eye(B, dtype=jnp.float32)[None, :, :, None]
              * pw[:, :, None, :]).reshape(2, B, N2)              # (2, B, N2)

    emb = _encode(x2, attn_bias, pool_w, params)                  # (2, B, H)
    if return_embeddings:
        return emb[0], emb[1]                                     # (code_emb, nl_emb)
    scores, loss = _scores_and_loss(emb)
    return loss, scores


# ---------------- deterministic parameter init ----------------
def init_params(key):
    def nrm(k, shape, scale=0.02):
        return (scale * jax.random.normal(k, shape)).astype(jnp.float32)

    def pad_row(v):
        v = jnp.asarray(v, jnp.float32).reshape(-1)
        return jnp.pad(v, (0, VEC_W - v.shape[0]))

    keys = iter(jax.random.split(key, 8))

    # packed small vectors: [emb_ln_g, emb_ln_b] + per layer
    # [bqkv, bo, ln1_g, ln1_b, b1, b2, ln2_g, ln2_b]
    rows = [pad_row(jnp.ones((H,))), pad_row(jnp.zeros((H,)))]
    for _ in range(NUM_LAYERS):
        rows += [pad_row(jnp.zeros((3 * H,))),
                 pad_row(jnp.zeros((H,))),
                 pad_row(jnp.ones((H,))),
                 pad_row(jnp.zeros((H,))),
                 pad_row(jnp.zeros((FFN,))),
                 pad_row(jnp.zeros((H,))),
                 pad_row(jnp.ones((H,))),
                 pad_row(jnp.zeros((H,)))]
    vecs = jnp.stack(rows, axis=0)                               # (VEC_ROWS, VEC_W)

    return {
        'word_emb': nrm(next(keys), (VOCAB, H)),
        'pos_emb': nrm(next(keys), (L + 2, H)),                  # padding-offset positions
        'type_emb': nrm(next(keys), (1, H)),
        'vecs': vecs,
        # big matmul weights staged in bf16 (MXU operands), stacked per layer
        'wqkv': nrm(next(keys), (NUM_LAYERS, H, 3 * H)).astype(jnp.bfloat16),
        'wo': nrm(next(keys), (NUM_LAYERS, H, H)).astype(jnp.bfloat16),
        'w1': nrm(next(keys), (NUM_LAYERS, H, FFN)).astype(jnp.bfloat16),
        'w2': nrm(next(keys), (NUM_LAYERS, FFN, H)).astype(jnp.bfloat16),
    }


if __name__ == "__main__":
    key = jax.random.PRNGKey(0)
    pkey, k1, k2 = jax.random.split(key, 3)
    params = init_params(pkey)

    code_ids = jax.random.randint(k1, (B, L), 0, VOCAB, dtype=jnp.int32)
    nl_ids = jax.random.randint(k2, (B, L), 0, VOCAB, dtype=jnp.int32)
    code_mask = jnp.array([[1] * L, [1] * (L - 2) + [0, 0]], dtype=jnp.int32)
    nl_mask = jnp.array([[1] * (L - 1) + [0], [1] * L], dtype=jnp.int32)

    loss, scores = codebert_contrastive_forward(
        params, code_ids, code_mask, nl_ids, nl_mask)
    code_emb, nl_emb = codebert_contrastive_forward(
        params, code_ids, code_mask, nl_ids, nl_mask, return_embeddings=True)
    jax.block_until_ready((loss, scores, code_emb, nl_emb))
    print("KERNEL_OK")
</pallas_src>

<mosaic_0001>
module attributes {stable_mosaic.version = 11 : i64} {
  func.func @score_loss_kernel(%arg0: memref<2x2x32xf32, #tpu.memory_space<vmem>>, %arg1: memref<2x3xf32, #tpu.memory_space<vmem>>) attributes {dimension_semantics = [], scalar_prefetch = 0 : i64, scratch_operands = 0 : i64, tpu.core_type = #tpu.core_type<tc>} {
    %c0 = arith.constant 0 : index
    %c0_0 = arith.constant 0 : index
    %c0_1 = arith.constant 0 : index
    %0 = vector.load %arg0[%c0, %c0_0, %c0_1] : memref<2x2x32xf32, #tpu.memory_space<vmem>>, vector<2x2x32xf32>
    %1 = vector.extract_strided_slice %0 {offsets = [0, 0, 0], sizes = [1, 2, 32], strides = [1, 1, 1]} : vector<2x2x32xf32> to vector<1x2x32xf32>
    %2 = vector.shape_cast %1 : vector<1x2x32xf32> to vector<2x32xf32>
    %3 = vector.extract_strided_slice %0 {offsets = [1, 0, 0], sizes = [1, 2, 32], strides = [1, 1, 1]} : vector<2x2x32xf32> to vector<1x2x32xf32>
    %4 = vector.shape_cast %3 : vector<1x2x32xf32> to vector<2x32xf32>
    %cst = arith.constant dense<0.000000e+00> : vector<2x2xf32>
    %5 = tpu.matmul %4, %2, %cst {dimension_numbers = #tpu.dot_dimension_numbers<[1], [1], [0], [0], [0, 0, 1, 0], [], []>} : vector<2x32xf32>, vector<2x32xf32>, vector<2x2xf32> -> vector<2x2xf32>
    %cst_2 = arith.constant 2.000000e+01 : f32
    %6 = vector.broadcast %cst_2 : f32 to vector<2x2xf32>
    %7 = arith.mulf %5, %6 : vector<2x2xf32>
    %8 = arith.mulf %4, %2 : vector<2x32xf32>
    %cst_3 = arith.constant dense<0.000000e+00> : vector<2xf32>
    %9 = vector.multi_reduction <add>, %8, %cst_3 [1] : vector<2x32xf32> to vector<2xf32>
    %10 = vector.shape_cast %9 : vector<2xf32> to vector<2x1xf32>
    %cst_4 = arith.constant 2.000000e+01 : f32
    %11 = vector.broadcast %cst_4 : f32 to vector<2x1xf32>
    %12 = arith.mulf %10, %11 : vector<2x1xf32>
    %cst_5 = arith.constant dense<0xFF800000> : vector<2xf32>
    %13 = vector.multi_reduction <maximumf>, %7, %cst_5 [1] : vector<2x2xf32> to vector<2xf32>
    %14 = vector.shape_cast %13 : vector<2xf32> to vector<2x1xf32>
    %15 = vector.broadcast %14 : vector<2x1xf32> to vector<2x2xf32>
    %16 = arith.subf %7, %15 : vector<2x2xf32>
    %17 = math.exp %16 : vector<2x2xf32>
    %cst_6 = arith.constant dense<0.000000e+00> : vector<2xf32>
    %18 = vector.multi_reduction <add>, %17, %cst_6 [1] : vector<2x2xf32> to vector<2xf32>
    %19 = vector.shape_cast %18 : vector<2xf32> to vector<2x1xf32>
    %20 = math.log %19 : vector<2x1xf32>
    %21 = arith.addf %14, %20 : vector<2x1xf32>
    %22 = arith.subf %21, %12 : vector<2x1xf32>
    %cst_7 = arith.constant dense<0.000000e+00> : vector<1xf32>
    %23 = vector.multi_reduction <add>, %22, %cst_7 [0] : vector<2x1xf32> to vector<1xf32>
    %24 = vector.shape_cast %23 : vector<1xf32> to vector<1x1xf32>
    %cst_8 = arith.constant 5.000000e-01 : f32
    %25 = vector.broadcast %cst_8 : f32 to vector<1x1xf32>
    %26 = arith.mulf %24, %25 : vector<1x1xf32>
    %27 = vector.shape_cast %26 : vector<1x1xf32> to vector<1x1xf32>
    %28 = vector.broadcast %27 : vector<1x1xf32> to vector<2x1xf32>
    %29 = tpu.concatenate %7, %28 in 1 : vector<2x2xf32>, vector<2x1xf32> -> vector<2x3xf32>
    %c0_9 = arith.constant 0 : index
    %c0_10 = arith.constant 0 : index
    %30 = vector.load %arg1[%c0_9, %c0_10] : memref<2x3xf32, #tpu.memory_space<vmem>>, vector<2x3xf32>
    tpu.vector_store %arg1[%c0_9, %c0_10], %29 {strides = array<i32>} : memref<2x3xf32, #tpu.memory_space<vmem>>, vector<2x3xf32>,
    return
  }
}

module attributes {stable_mosaic.version = 11 : i64} {
  func.func @encoder_kernel(%arg0: i32, %arg1: memref<1x16x32xf32, #tpu.memory_space<vmem>>, %arg2: memref<1x32x32xf32, #tpu.memory_space<vmem>>, %arg3: memref<1x2x16xf32, #tpu.memory_space<vmem>>, %arg4: memref<18x96xf32, #tpu.memory_space<vmem>>, %arg5: memref<2x32x96xbf16, #tpu.memory_space<vmem>>, %arg6: memref<2x32x32xbf16, #tpu.memory_space<vmem>>, %arg7: memref<2x32x64xbf16, #tpu.memory_space<vmem>>, %arg8: memref<2x64x32xbf16, #tpu.memory_space<vmem>>, %arg9: memref<1x2x32xf32, #tpu.memory_space<vmem>>) attributes {dimension_semantics = [#tpu.dimension_semantics<parallel>], iteration_bounds = array<i64: 2>, scalar_prefetch = 0 : i64, scratch_operands = 0 : i64, tpu.core_type = #tpu.core_type<tc>, window_params = [{transform_indices = @transform_0, window_bounds = array<i64: 1, 16, 32>}, {transform_indices = @transform_1, window_bounds = array<i64: 1, 32, 32>}, {transform_indices = @transform_2, window_bounds = array<i64: 1, 2, 16>}, {pipeline_mode = #tpu.pipeline_mode<synchronous>, transform_indices = @transform_3, window_bounds = array<i64: 18, 96>}, {pipeline_mode = #tpu.pipeline_mode<synchronous>, transform_indices = @transform_4, window_bounds = array<i64: 2, 32, 96>}, {pipeline_mode = #tpu.pipeline_mode<synchronous>, transform_indices = @transform_5, window_bounds = array<i64: 2, 32, 32>}, {pipeline_mode = #tpu.pipeline_mode<synchronous>, transform_indices = @transform_6, window_bounds = array<i64: 2, 32, 64>}, {pipeline_mode = #tpu.pipeline_mode<synchronous>, transform_indices = @transform_7, window_bounds = array<i64: 2, 64, 32>}, {transform_indices = @transform_8, window_bounds = array<i64: 1, 2, 32>}]} {
    %c0 = arith.constant 0 : index
    %c0_0 = arith.constant 0 : index
    %c0_1 = arith.constant 0 : index
    %0 = vector.load %arg1[%c0, %c0_0, %c0_1] : memref<1x16x32xf32, #tpu.memory_space<vmem>>, vector<1x16x32xf32>
    %1 = vector.shape_cast %0 : vector<1x16x32xf32> to vector<16x32xf32>
    %c0_2 = arith.constant 0 : index
    %c0_3 = arith.constant 0 : index
    %c0_4 = arith.constant 0 : index
    %2 = vector.load %arg2[%c0_2, %c0_3, %c0_4] : memref<1x32x32xf32, #tpu.memory_space<vmem>>, vector<1x32x32xf32>
    %3 = vector.shape_cast %2 : vector<1x32x32xf32> to vector<32x32xf32>
    %c0_5 = arith.constant 0 : index
    %c0_6 = arith.constant 0 : index
    %c0_7 = arith.constant 0 : index
    %4 = vector.load %arg3[%c0_5, %c0_6, %c0_7] : memref<1x2x16xf32, #tpu.memory_space<vmem>>, vector<1x2x16xf32>
    %5 = vector.shape_cast %4 : vector<1x2x16xf32> to vector<2x16xf32>
    %c0_8 = arith.constant 0 : index
    %c0_9 = arith.constant 0 : index
    %6 = vector.load %arg4[%c0_8, %c0_9] : memref<18x96xf32, #tpu.memory_space<vmem>>, vector<18x96xf32>
    %7 = vector.extract_strided_slice %6 {offsets = [0, 0], sizes = [1, 32], strides = [1, 1]} : vector<18x96xf32> to vector<1x32xf32>
    %8 = vector.extract_strided_slice %6 {offsets = [1, 0], sizes = [1, 32], strides = [1, 1]} : vector<18x96xf32> to vector<1x32xf32>
    %cst = arith.constant dense<0.000000e+00> : vector<16xf32>
    %9 = vector.multi_reduction <add>, %1, %cst [1] : vector<16x32xf32> to vector<16xf32>
    %10 = vector.shape_cast %9 : vector<16xf32> to vector<16x1xf32>
    %cst_10 = arith.constant 3.200000e+01 : f32
    %11 = vector.broadcast %cst_10 : f32 to vector<16x1xf32>
    %12 = arith.divf %10, %11 : vector<16x1xf32>
    %13 = vector.broadcast %12 : vector<16x1xf32> to vector<16x32xf32>
    %14 = arith.subf %1, %13 : vector<16x32xf32>
    %15 = arith.mulf %14, %14 : vector<16x32xf32>
    %cst_11 = arith.constant dense<0.000000e+00> : vector<16xf32>
    %16 = vector.multi_reduction <add>, %15, %cst_11 [1] : vector<16x32xf32> to vector<16xf32>
    %17 = vector.shape_cast %16 : vector<16xf32> to vector<16x1xf32>
    %cst_12 = arith.constant 3.200000e+01 : f32
    %18 = vector.broadcast %cst_12 : f32 to vector<16x1xf32>
    %19 = arith.divf %17, %18 : vector<16x1xf32>
    %20 = vector.broadcast %12 : vector<16x1xf32> to vector<16x32xf32>
    %21 = arith.subf %1, %20 : vector<16x32xf32>
    %cst_13 = arith.constant 9.99999996E-13 : f32
    %22 = vector.broadcast %cst_13 : f32 to vector<16x1xf32>
    %23 = arith.addf %19, %22 : vector<16x1xf32>
    %24 = math.rsqrt %23 : vector<16x1xf32>
    %25 = vector.broadcast %24 : vector<16x1xf32> to vector<16x32xf32>
    %26 = arith.mulf %21, %25 : vector<16x32xf32>
    %27 = vector.broadcast %7 : vector<1x32xf32> to vector<16x32xf32>
    %28 = arith.mulf %26, %27 : vector<16x32xf32>
    %29 = vector.broadcast %8 : vector<1x32xf32> to vector<16x32xf32>
    %30 = arith.addf %28, %29 : vector<16x32xf32>
    %c0_14 = arith.constant 0 : index
    %c0_15 = arith.constant 0 : index
    %c0_16 = arith.constant 0 : index
    %31 = vector.load %arg5[%c0_14, %c0_15, %c0_16] : memref<2x32x96xbf16, #tpu.memory_space<vmem>>, vector<1x32x96xbf16>
    %32 = vector.shape_cast %31 : vector<1x32x96xbf16> to vector<32x96xbf16>
    %c0_17 = arith.constant 0 : index
    %c0_18 = arith.constant 0 : index
    %c0_19 = arith.constant 0 : index
    %33 = vector.load %arg6[%c0_17, %c0_18, %c0_19] : memref<2x32x32xbf16, #tpu.memory_space<vmem>>, vector<1x32x32xbf16>
    %34 = vector.shape_cast %33 : vector<1x32x32xbf16> to vector<32x32xbf16>
    %c0_20 = arith.constant 0 : index
    %c0_21 = arith.constant 0 : index
    %c0_22 = arith.constant 0 : index
    %35 = vector.load %arg7[%c0_20, %c0_21, %c0_22] : memref<2x32x64xbf16, #tpu.memory_space<vmem>>, vector<1x32x64xbf16>
    %36 = vector.shape_cast %35 : vector<1x32x64xbf16> to vector<32x64xbf16>
    %c0_23 = arith.constant 0 : index
    %c0_24 = arith.constant 0 : index
    %c0_25 = arith.constant 0 : index
    %37 = vector.load %arg8[%c0_23, %c0_24, %c0_25] : memref<2x64x32xbf16, #tpu.memory_space<vmem>>, vector<1x64x32xbf16>
    %38 = vector.shape_cast %37 : vector<1x64x32xbf16> to vector<64x32xbf16>
    %39 = vector.extract_strided_slice %6 {offsets = [2, 0], sizes = [1, 96], strides = [1, 1]} : vector<18x96xf32> to vector<1x96xf32>
    %40 = vector.extract_strided_slice %6 {offsets = [3, 0], sizes = [1, 32], strides = [1, 1]} : vector<18x96xf32> to vector<1x32xf32>
    %41 = vector.extract_strided_slice %6 {offsets = [4, 0], sizes = [1, 32], strides = [1, 1]} : vector<18x96xf32> to vector<1x32xf32>
    %42 = vector.extract_strided_slice %6 {offsets = [5, 0], sizes = [1, 32], strides = [1, 1]} : vector<18x96xf32> to vector<1x32xf32>
    %43 = vector.extract_strided_slice %6 {offsets = [6, 0], sizes = [1, 64], strides = [1, 1]} : vector<18x96xf32> to vector<1x64xf32>
    %44 = vector.extract_strided_slice %6 {offsets = [7, 0], sizes = [1, 32], strides = [1, 1]} : vector<18x96xf32> to vector<1x32xf32>
    %45 = vector.extract_strided_slice %6 {offsets = [8, 0], sizes = [1, 32], strides = [1, 1]} : vector<18x96xf32> to vector<1x32xf32>
    %46 = vector.extract_strided_slice %6 {offsets = [9, 0], sizes = [1, 32], strides = [1, 1]} : vector<18x96xf32> to vector<1x32xf32>
    %47 = arith.truncf %30 : vector<16x32xf32> to vector<16x32xbf16>
    %cst_26 = arith.constant dense<0.000000e+00> : vector<16x96xf32>
    %48 = tpu.matmul %47, %32, %cst_26 {dimension_numbers = #tpu.dot_dimension_numbers<[1], [0], [0], [1], [0, 0, 1, 1], [], []>} : vector<16x32xbf16>, vector<32x96xbf16>, vector<16x96xf32> -> vector<16x96xf32>
    %49 = vector.broadcast %39 : vector<1x96xf32> to vector<16x96xf32>
    %50 = arith.addf %48, %49 : vector<16x96xf32>
    %51 = vector.extract_strided_slice %50 {offsets = [0, 0], sizes = [16, 16], strides = [1, 1]} : vector<16x96xf32> to vector<16x16xf32>
    %52 = vector.extract_strided_slice %50 {offsets = [0, 16], sizes = [16, 16], strides = [1, 1]} : vector<16x96xf32> to vector<16x16xf32>
    %53 = tpu.concatenate %51, %52 in 0 : vector<16x16xf32>, vector<16x16xf32> -> vector<32x16xf32>
    %54 = vector.extract_strided_slice %50 {offsets = [0, 32], sizes = [16, 16], strides = [1, 1]} : vector<16x96xf32> to vector<16x16xf32>
    %55 = vector.extract_strided_slice %50 {offsets = [0, 48], sizes = [16, 16], strides = [1, 1]} : vector<16x96xf32> to vector<16x16xf32>
    %56 = tpu.concatenate %54, %55 in 0 : vector<16x16xf32>, vector<16x16xf32> -> vector<32x16xf32>
    %57 = vector.extract_strided_slice %50 {offsets = [0, 64], sizes = [16, 16], strides = [1, 1]} : vector<16x96xf32> to vector<16x16xf32>
    %58 = vector.extract_strided_slice %50 {offsets = [0, 80], sizes = [16, 16], strides = [1, 1]} : vector<16x96xf32> to vector<16x16xf32>
    %59 = tpu.concatenate %57, %58 in 0 : vector<16x16xf32>, vector<16x16xf32> -> vector<32x16xf32>
    %cst_27 = arith.constant 2.500000e-01 : f32
    %60 = vector.broadcast %cst_27 : f32 to vector<32x16xf32>
    %61 = arith.mulf %53, %60 : vector<32x16xf32>
    %62 = arith.truncf %61 : vector<32x16xf32> to vector<32x16xbf16>
    %63 = arith.truncf %56 : vector<32x16xf32> to vector<32x16xbf16>
    %cst_28 = arith.constant dense<0.000000e+00> : vector<32x32xf32>
    %64 = tpu.matmul %62, %63, %cst_28 {dimension_numbers = #tpu.dot_dimension_numbers<[1], [1], [0], [0], [0, 0, 1, 0], [], []>} : vector<32x16xbf16>, vector<32x16xbf16>, vector<32x32xf32> -> vector<32x32xf32>
    %65 = arith.addf %64, %3 : vector<32x32xf32>
    %cst_29 = arith.constant dense<0xFF800000> : vector<32xf32>
    %66 = vector.multi_reduction <maximumf>, %65, %cst_29 [1] : vector<32x32xf32> to vector<32xf32>
    %67 = vector.shape_cast %66 : vector<32xf32> to vector<32x1xf32>
    %68 = vector.broadcast %67 : vector<32x1xf32> to vector<32x32xf32>
    %69 = arith.subf %65, %68 : vector<32x32xf32>
    %70 = math.exp %69 : vector<32x32xf32>
    %cst_30 = arith.constant dense<0.000000e+00> : vector<32xf32>
    %71 = vector.multi_reduction <add>, %70, %cst_30 [1] : vector<32x32xf32> to vector<32xf32>
    %72 = vector.shape_cast %71 : vector<32xf32> to vector<32x1xf32>
    %73 = tpu.reciprocal %72 {approx = true} : vector<32x1xf32> -> vector<32x1xf32>
    %74 = vector.broadcast %73 : vector<32x1xf32> to vector<32x32xf32>
    %75 = arith.mulf %70, %74 : vector<32x32xf32>
    %76 = arith.truncf %75 : vector<32x32xf32> to vector<32x32xbf16>
    %77 = arith.truncf %59 : vector<32x16xf32> to vector<32x16xbf16>
    %cst_31 = arith.constant dense<0.000000e+00> : vector<32x16xf32>
    %78 = tpu.matmul %76, %77, %cst_31 {dimension_numbers = #tpu.dot_dimension_numbers<[1], [0], [0], [1], [0, 0, 1, 1], [], []>} : vector<32x32xbf16>, vector<32x16xbf16>, vector<32x16xf32> -> vector<32x16xf32>
    %79 = vector.extract_strided_slice %78 {offsets = [0, 0], sizes = [16, 16], strides = [1, 1]} : vector<32x16xf32> to vector<16x16xf32>
    %80 = vector.extract_strided_slice %78 {offsets = [16, 0], sizes = [16, 16], strides = [1, 1]} : vector<32x16xf32> to vector<16x16xf32>
    %81 = tpu.concatenate %79, %80 in 1 : vector<16x16xf32>, vector<16x16xf32> -> vector<16x32xf32>
    %82 = arith.truncf %81 : vector<16x32xf32> to vector<16x32xbf16>
    %cst_32 = arith.constant dense<0.000000e+00> : vector<16x32xf32>
    %83 = tpu.matmul %82, %34, %cst_32 {dimension_numbers = #tpu.dot_dimension_numbers<[1], [0], [0], [1], [0, 0, 1, 1], [], []>} : vector<16x32xbf16>, vector<32x32xbf16>, vector<16x32xf32> -> vector<16x32xf32>
    %84 = vector.broadcast %40 : vector<1x32xf32> to vector<16x32xf32>
    %85 = arith.addf %83, %84 : vector<16x32xf32>
    %86 = arith.addf %30, %85 : vector<16x32xf32>
    %cst_33 = arith.constant dense<0.000000e+00> : vector<16xf32>
    %87 = vector.multi_reduction <add>, %86, %cst_33 [1] : vector<16x32xf32> to vector<16xf32>
    %88 = vector.shape_cast %87 : vector<16xf32> to vector<16x1xf32>
    %cst_34 = arith.constant 3.200000e+01 : f32
    %89 = vector.broadcast %cst_34 : f32 to vector<16x1xf32>
    %90 = arith.divf %88, %89 : vector<16x1xf32>
    %91 = vector.broadcast %90 : vector<16x1xf32> to vector<16x32xf32>
    %92 = arith.subf %86, %91 : vector<16x32xf32>
    %93 = arith.mulf %92, %92 : vector<16x32xf32>
    %cst_35 = arith.constant dense<0.000000e+00> : vector<16xf32>
    %94 = vector.multi_reduction <add>, %93, %cst_35 [1] : vector<16x32xf32> to vector<16xf32>
    %95 = vector.shape_cast %94 : vector<16xf32> to vector<16x1xf32>
    %cst_36 = arith.constant 3.200000e+01 : f32
    %96 = vector.broadcast %cst_36 : f32 to vector<16x1xf32>
    %97 = arith.divf %95, %96 : vector<16x1xf32>
    %98 = vector.broadcast %90 : vector<16x1xf32> to vector<16x32xf32>
    %99 = arith.subf %86, %98 : vector<16x32xf32>
    %cst_37 = arith.constant 9.99999996E-13 : f32
    %100 = vector.broadcast %cst_37 : f32 to vector<16x1xf32>
    %101 = arith.addf %97, %100 : vector<16x1xf32>
    %102 = math.rsqrt %101 : vector<16x1xf32>
    %103 = vector.broadcast %102 : vector<16x1xf32> to vector<16x32xf32>
    %104 = arith.mulf %99, %103 : vector<16x32xf32>
    %105 = vector.broadcast %41 : vector<1x32xf32> to vector<16x32xf32>
    %106 = arith.mulf %104, %105 : vector<16x32xf32>
    %107 = vector.broadcast %42 : vector<1x32xf32> to vector<16x32xf32>
    %108 = arith.addf %106, %107 : vector<16x32xf32>
    %109 = arith.truncf %108 : vector<16x32xf32> to vector<16x32xbf16>
    %cst_38 = arith.constant dense<0.000000e+00> : vector<16x64xf32>
    %110 = tpu.matmul %109, %36, %cst_38 {dimension_numbers = #tpu.dot_dimension_numbers<[1], [0], [0], [1], [0, 0, 1, 1], [], []>} : vector<16x32xbf16>, vector<32x64xbf16>, vector<16x64xf32> -> vector<16x64xf32>
    %111 = vector.broadcast %43 : vector<1x64xf32> to vector<16x64xf32>
    %112 = arith.addf %110, %111 : vector<16x64xf32>
    %113 = arith.mulf %112, %112 : vector<16x64xf32>
    %114 = arith.mulf %112, %113 : vector<16x64xf32>
    %cst_39 = arith.constant 4.471500e-02 : f32
    %115 = vector.broadcast %cst_39 : f32 to vector<16x64xf32>
    %116 = arith.mulf %115, %114 : vector<16x64xf32>
    %117 = arith.addf %112, %116 : vector<16x64xf32>
    %cst_40 = arith.constant 0.797884583 : f32
    %118 = vector.broadcast %cst_40 : f32 to vector<16x64xf32>
    %119 = arith.mulf %118, %117 : vector<16x64xf32>
    %120 = math.tanh %119 : vector<16x64xf32>
    %cst_41 = arith.constant 1.000000e+00 : f32
    %121 = vector.broadcast %cst_41 : f32 to vector<16x64xf32>
    %122 = arith.addf %121, %120 : vector<16x64xf32>
    %cst_42 = arith.constant 5.000000e-01 : f32
    %123 = vector.broadcast %cst_42 : f32 to vector<16x64xf32>
    %124 = arith.mulf %123, %122 : vector<16x64xf32>
    %125 = arith.mulf %112, %124 : vector<16x64xf32>
    %126 = arith.truncf %125 : vector<16x64xf32> to vector<16x64xbf16>
    %cst_43 = arith.constant dense<0.000000e+00> : vector<16x32xf32>
    %127 = tpu.matmul %126, %38, %cst_43 {dimension_numbers = #tpu.dot_dimension_numbers<[1], [0], [0], [1], [0, 0, 1, 1], [], []>} : vector<16x64xbf16>, vector<64x32xbf16>, vector<16x32xf32> -> vector<16x32xf32>
    %128 = vector.broadcast %44 : vector<1x32xf32> to vector<16x32xf32>
    %129 = arith.addf %127, %128 : vector<16x32xf32>
    %130 = arith.addf %108, %129 : vector<16x32xf32>
    %cst_44 = arith.constant dense<0.000000e+00> : vector<16xf32>
    %131 = vector.multi_reduction <add>, %130, %cst_44 [1] : vector<16x32xf32> to vector<16xf32>
    %132 = vector.shape_cast %131 : vector<16xf32> to vector<16x1xf32>
    %cst_45 = arith.constant 3.200000e+01 : f32
    %133 = vector.broadcast %cst_45 : f32 to vector<16x1xf32>
    %134 = arith.divf %132, %133 : vector<16x1xf32>
    %135 = vector.broadcast %134 : vector<16x1xf32> to vector<16x32xf32>
    %136 = arith.subf %130, %135 : vector<16x32xf32>
    %137 = arith.mulf %136, %136 : vector<16x32xf32>
    %cst_46 = arith.constant dense<0.000000e+00> : vector<16xf32>
    %138 = vector.multi_reduction <add>, %137, %cst_46 [1] : vector<16x32xf32> to vector<16xf32>
    %139 = vector.shape_cast %138 : vector<16xf32> to vector<16x1xf32>
    %cst_47 = arith.constant 3.200000e+01 : f32
    %140 = vector.broadcast %cst_47 : f32 to vector<16x1xf32>
    %141 = arith.divf %139, %140 : vector<16x1xf32>
    %142 = vector.broadcast %134 : vector<16x1xf32> to vector<16x32xf32>
    %143 = arith.subf %130, %142 : vector<16x32xf32>
    %cst_48 = arith.constant 9.99999996E-13 : f32
    %144 = vector.broadcast %cst_48 : f32 to vector<16x1xf32>
    %145 = arith.addf %141, %144 : vector<16x1xf32>
    %146 = math.rsqrt %145 : vector<16x1xf32>
    %147 = vector.broadcast %146 : vector<16x1xf32> to vector<16x32xf32>
    %148 = arith.mulf %143, %147 : vector<16x32xf32>
    %149 = vector.broadcast %45 : vector<1x32xf32> to vector<16x32xf32>
    %150 = arith.mulf %148, %149 : vector<16x32xf32>
    %151 = vector.broadcast %46 : vector<1x32xf32> to vector<16x32xf32>
    %152 = arith.addf %150, %151 : vector<16x32xf32>
    %c1 = arith.constant 1 : index
    %c0_49 = arith.constant 0 : index
    %c0_50 = arith.constant 0 : index
    %153 = vector.load %arg5[%c1, %c0_49, %c0_50] : memref<2x32x96xbf16, #tpu.memory_space<vmem>>, vector<1x32x96xbf16>
    %154 = vector.shape_cast %153 : vector<1x32x96xbf16> to vector<32x96xbf16>
    %c1_51 = arith.constant 1 : index
    %c0_52 = arith.constant 0 : index
    %c0_53 = arith.constant 0 : index
    %155 = vector.load %arg6[%c1_51, %c0_52, %c0_53] : memref<2x32x32xbf16, #tpu.memory_space<vmem>>, vector<1x32x32xbf16>
    %156 = vector.shape_cast %155 : vector<1x32x32xbf16> to vector<32x32xbf16>
    %c1_54 = arith.constant 1 : index
    %c0_55 = arith.constant 0 : index
    %c0_56 = arith.constant 0 : index
    %157 = vector.load %arg7[%c1_54, %c0_55, %c0_56] : memref<2x32x64xbf16, #tpu.memory_space<vmem>>, vector<1x32x64xbf16>
    %158 = vector.shape_cast %157 : vector<1x32x64xbf16> to vector<32x64xbf16>
    %c1_57 = arith.constant 1 : index
    %c0_58 = arith.constant 0 : index
    %c0_59 = arith.constant 0 : index
    %159 = vector.load %arg8[%c1_57, %c0_58, %c0_59] : memref<2x64x32xbf16, #tpu.memory_space<vmem>>, vector<1x64x32xbf16>
    %160 = vector.shape_cast %159 : vector<1x64x32xbf16> to vector<64x32xbf16>
    %161 = vector.extract_strided_slice %6 {offsets = [10, 0], sizes = [1, 96], strides = [1, 1]} : vector<18x96xf32> to vector<1x96xf32>
    %162 = vector.extract_strided_slice %6 {offsets = [11, 0], sizes = [1, 32], strides = [1, 1]} : vector<18x96xf32> to vector<1x32xf32>
    %163 = vector.extract_strided_slice %6 {offsets = [12, 0], sizes = [1, 32], strides = [1, 1]} : vector<18x96xf32> to vector<1x32xf32>
    %164 = vector.extract_strided_slice %6 {offsets = [13, 0], sizes = [1, 32], strides = [1, 1]} : vector<18x96xf32> to vector<1x32xf32>
    %165 = vector.extract_strided_slice %6 {offsets = [14, 0], sizes = [1, 64], strides = [1, 1]} : vector<18x96xf32> to vector<1x64xf32>
    %166 = vector.extract_strided_slice %6 {offsets = [15, 0], sizes = [1, 32], strides = [1, 1]} : vector<18x96xf32> to vector<1x32xf32>
    %167 = vector.extract_strided_slice %6 {offsets = [16, 0], sizes = [1, 32], strides = [1, 1]} : vector<18x96xf32> to vector<1x32xf32>
    %168 = vector.extract_strided_slice %6 {offsets = [17, 0], sizes = [1, 32], strides = [1, 1]} : vector<18x96xf32> to vector<1x32xf32>
    %169 = arith.truncf %152 : vector<16x32xf32> to vector<16x32xbf16>
    %cst_60 = arith.constant dense<0.000000e+00> : vector<16x96xf32>
    %170 = tpu.matmul %169, %154, %cst_60 {dimension_numbers = #tpu.dot_dimension_numbers<[1], [0], [0], [1], [0, 0, 1, 1], [], []>} : vector<16x32xbf16>, vector<32x96xbf16>, vector<16x96xf32> -> vector<16x96xf32>
    %171 = vector.broadcast %161 : vector<1x96xf32> to vector<16x96xf32>
    %172 = arith.addf %170, %171 : vector<16x96xf32>
    %173 = vector.extract_strided_slice %172 {offsets = [0, 0], sizes = [16, 16], strides = [1, 1]} : vector<16x96xf32> to vector<16x16xf32>
    %174 = vector.extract_strided_slice %172 {offsets = [0, 16], sizes = [16, 16], strides = [1, 1]} : vector<16x96xf32> to vector<16x16xf32>
    %175 = tpu.concatenate %173, %174 in 0 : vector<16x16xf32>, vector<16x16xf32> -> vector<32x16xf32>
    %176 = vector.extract_strided_slice %172 {offsets = [0, 32], sizes = [16, 16], strides = [1, 1]} : vector<16x96xf32> to vector<16x16xf32>
    %177 = vector.extract_strided_slice %172 {offsets = [0, 48], sizes = [16, 16], strides = [1, 1]} : vector<16x96xf32> to vector<16x16xf32>
    %178 = tpu.concatenate %176, %177 in 0 : vector<16x16xf32>, vector<16x16xf32> -> vector<32x16xf32>
    %179 = vector.extract_strided_slice %172 {offsets = [0, 64], sizes = [16, 16], strides = [1, 1]} : vector<16x96xf32> to vector<16x16xf32>
    %180 = vector.extract_strided_slice %172 {offsets = [0, 80], sizes = [16, 16], strides = [1, 1]} : vector<16x96xf32> to vector<16x16xf32>
    %181 = tpu.concatenate %179, %180 in 0 : vector<16x16xf32>, vector<16x16xf32> -> vector<32x16xf32>
    %cst_61 = arith.constant 2.500000e-01 : f32
    %182 = vector.broadcast %cst_61 : f32 to vector<32x16xf32>
    %183 = arith.mulf %175, %182 : vector<32x16xf32>
    %184 = arith.truncf %183 : vector<32x16xf32> to vector<32x16xbf16>
    %185 = arith.truncf %178 : vector<32x16xf32> to vector<32x16xbf16>
    %cst_62 = arith.constant dense<0.000000e+00> : vector<32x32xf32>
    %186 = tpu.matmul %184, %185, %cst_62 {dimension_numbers = #tpu.dot_dimension_numbers<[1], [1], [0], [0], [0, 0, 1, 0], [], []>} : vector<32x16xbf16>, vector<32x16xbf16>, vector<32x32xf32> -> vector<32x32xf32>
    %187 = arith.addf %186, %3 : vector<32x32xf32>
    %cst_63 = arith.constant dense<0xFF800000> : vector<32xf32>
    %188 = vector.multi_reduction <maximumf>, %187, %cst_63 [1] : vector<32x32xf32> to vector<32xf32>
    %189 = vector.shape_cast %188 : vector<32xf32> to vector<32x1xf32>
    %190 = vector.broadcast %189 : vector<32x1xf32> to vector<32x32xf32>
    %191 = arith.subf %187, %190 : vector<32x32xf32>
    %192 = math.exp %191 : vector<32x32xf32>
    %cst_64 = arith.constant dense<0.000000e+00> : vector<32xf32>
    %193 = vector.multi_reduction <add>, %192, %cst_64 [1] : vector<32x32xf32> to vector<32xf32>
    %194 = vector.shape_cast %193 : vector<32xf32> to vector<32x1xf32>
    %195 = tpu.reciprocal %194 {approx = true} : vector<32x1xf32> -> vector<32x1xf32>
    %196 = vector.broadcast %195 : vector<32x1xf32> to vector<32x32xf32>
    %197 = arith.mulf %192, %196 : vector<32x32xf32>
    %198 = arith.truncf %197 : vector<32x32xf32> to vector<32x32xbf16>
    %199 = arith.truncf %181 : vector<32x16xf32> to vector<32x16xbf16>
    %cst_65 = arith.constant dense<0.000000e+00> : vector<32x16xf32>
    %200 = tpu.matmul %198, %199, %cst_65 {dimension_numbers = #tpu.dot_dimension_numbers<[1], [0], [0], [1], [0, 0, 1, 1], [], []>} : vector<32x32xbf16>, vector<32x16xbf16>, vector<32x16xf32> -> vector<32x16xf32>
    %201 = vector.extract_strided_slice %200 {offsets = [0, 0], sizes = [16, 16], strides = [1, 1]} : vector<32x16xf32> to vector<16x16xf32>
    %202 = vector.extract_strided_slice %200 {offsets = [16, 0], sizes = [16, 16], strides = [1, 1]} : vector<32x16xf32> to vector<16x16xf32>
    %203 = tpu.concatenate %201, %202 in 1 : vector<16x16xf32>, vector<16x16xf32> -> vector<16x32xf32>
    %204 = arith.truncf %203 : vector<16x32xf32> to vector<16x32xbf16>
    %cst_66 = arith.constant dense<0.000000e+00> : vector<16x32xf32>
    %205 = tpu.matmul %204, %156, %cst_66 {dimension_numbers = #tpu.dot_dimension_numbers<[1], [0], [0], [1], [0, 0, 1, 1], [], []>} : vector<16x32xbf16>, vector<32x32xbf16>, vector<16x32xf32> -> vector<16x32xf32>
    %206 = vector.broadcast %162 : vector<1x32xf32> to vector<16x32xf32>
    %207 = arith.addf %205, %206 : vector<16x32xf32>
    %208 = arith.addf %152, %207 : vector<16x32xf32>
    %cst_67 = arith.constant dense<0.000000e+00> : vector<16xf32>
    %209 = vector.multi_reduction <add>, %208, %cst_67 [1] : vector<16x32xf32> to vector<16xf32>
    %210 = vector.shape_cast %209 : vector<16xf32> to vector<16x1xf32>
    %cst_68 = arith.constant 3.200000e+01 : f32
    %211 = vector.broadcast %cst_68 : f32 to vector<16x1xf32>
    %212 = arith.divf %210, %211 : vector<16x1xf32>
    %213 = vector.broadcast %212 : vector<16x1xf32> to vector<16x32xf32>
    %214 = arith.subf %208, %213 : vector<16x32xf32>
    %215 = arith.mulf %214, %214 : vector<16x32xf32>
    %cst_69 = arith.constant dense<0.000000e+00> : vector<16xf32>
    %216 = vector.multi_reduction <add>, %215, %cst_69 [1] : vector<16x32xf32> to vector<16xf32>
    %217 = vector.shape_cast %216 : vector<16xf32> to vector<16x1xf32>
    %cst_70 = arith.constant 3.200000e+01 : f32
    %218 = vector.broadcast %cst_70 : f32 to vector<16x1xf32>
    %219 = arith.divf %217, %218 : vector<16x1xf32>
    %220 = vector.broadcast %212 : vector<16x1xf32> to vector<16x32xf32>
    %221 = arith.subf %208, %220 : vector<16x32xf32>
    %cst_71 = arith.constant 9.99999996E-13 : f32
    %222 = vector.broadcast %cst_71 : f32 to vector<16x1xf32>
    %223 = arith.addf %219, %222 : vector<16x1xf32>
    %224 = math.rsqrt %223 : vector<16x1xf32>
    %225 = vector.broadcast %224 : vector<16x1xf32> to vector<16x32xf32>
    %226 = arith.mulf %221, %225 : vector<16x32xf32>
    %227 = vector.broadcast %163 : vector<1x32xf32> to vector<16x32xf32>
    %228 = arith.mulf %226, %227 : vector<16x32xf32>
    %229 = vector.broadcast %164 : vector<1x32xf32> to vector<16x32xf32>
    %230 = arith.addf %228, %229 : vector<16x32xf32>
    %231 = arith.truncf %230 : vector<16x32xf32> to vector<16x32xbf16>
    %cst_72 = arith.constant dense<0.000000e+00> : vector<16x64xf32>
    %232 = tpu.matmul %231, %158, %cst_72 {dimension_numbers = #tpu.dot_dimension_numbers<[1], [0], [0], [1], [0, 0, 1, 1], [], []>} : vector<16x32xbf16>, vector<32x64xbf16>, vector<16x64xf32> -> vector<16x64xf32>
    %233 = vector.broadcast %165 : vector<1x64xf32> to vector<16x64xf32>
    %234 = arith.addf %232, %233 : vector<16x64xf32>
    %235 = arith.mulf %234, %234 : vector<16x64xf32>
    %236 = arith.mulf %234, %235 : vector<16x64xf32>
    %cst_73 = arith.constant 4.471500e-02 : f32
    %237 = vector.broadcast %cst_73 : f32 to vector<16x64xf32>
    %238 = arith.mulf %237, %236 : vector<16x64xf32>
    %239 = arith.addf %234, %238 : vector<16x64xf32>
    %cst_74 = arith.constant 0.797884583 : f32
    %240 = vector.broadcast %cst_74 : f32 to vector<16x64xf32>
    %241 = arith.mulf %240, %239 : vector<16x64xf32>
    %242 = math.tanh %241 : vector<16x64xf32>
    %cst_75 = arith.constant 1.000000e+00 : f32
    %243 = vector.broadcast %cst_75 : f32 to vector<16x64xf32>
    %244 = arith.addf %243, %242 : vector<16x64xf32>
    %cst_76 = arith.constant 5.000000e-01 : f32
    %245 = vector.broadcast %cst_76 : f32 to vector<16x64xf32>
    %246 = arith.mulf %245, %244 : vector<16x64xf32>
    %247 = arith.mulf %234, %246 : vector<16x64xf32>
    %248 = arith.truncf %247 : vector<16x64xf32> to vector<16x64xbf16>
    %cst_77 = arith.constant dense<0.000000e+00> : vector<16x32xf32>
    %249 = tpu.matmul %248, %160, %cst_77 {dimension_numbers = #tpu.dot_dimension_numbers<[1], [0], [0], [1], [0, 0, 1, 1], [], []>} : vector<16x64xbf16>, vector<64x32xbf16>, vector<16x32xf32> -> vector<16x32xf32>
    %250 = vector.broadcast %166 : vector<1x32xf32> to vector<16x32xf32>
    %251 = arith.addf %249, %250 : vector<16x32xf32>
    %252 = arith.addf %230, %251 : vector<16x32xf32>
    %cst_78 = arith.constant dense<0.000000e+00> : vector<16xf32>
    %253 = vector.multi_reduction <add>, %252, %cst_78 [1] : vector<16x32xf32> to vector<16xf32>
    %254 = vector.shape_cast %253 : vector<16xf32> to vector<16x1xf32>
    %cst_79 = arith.constant 3.200000e+01 : f32
    %255 = vector.broadcast %cst_79 : f32 to vector<16x1xf32>
    %256 = arith.divf %254, %255 : vector<16x1xf32>
    %257 = vector.broadcast %256 : vector<16x1xf32> to vector<16x32xf32>
    %258 = arith.subf %252, %257 : vector<16x32xf32>
    %259 = arith.mulf %258, %258 : vector<16x32xf32>
    %cst_80 = arith.constant dense<0.000000e+00> : vector<16xf32>
    %260 = vector.multi_reduction <add>, %259, %cst_80 [1] : vector<16x32xf32> to vector<16xf32>
    %261 = vector.shape_cast %260 : vector<16xf32> to vector<16x1xf32>
    %cst_81 = arith.constant 3.200000e+01 : f32
    %262 = vector.broadcast %cst_81 : f32 to vector<16x1xf32>
    %263 = arith.divf %261, %262 : vector<16x1xf32>
    %264 = vector.broadcast %256 : vector<16x1xf32> to vector<16x32xf32>
    %265 = arith.subf %252, %264 : vector<16x32xf32>
    %cst_82 = arith.constant 9.99999996E-13 : f32
    %266 = vector.broadcast %cst_82 : f32 to vector<16x1xf32>
    %267 = arith.addf %263, %266 : vector<16x1xf32>
    %268 = math.rsqrt %267 : vector<16x1xf32>
    %269 = vector.broadcast %268 : vector<16x1xf32> to vector<16x32xf32>
    %270 = arith.mulf %265, %269 : vector<16x32xf32>
    %271 = vector.broadcast %167 : vector<1x32xf32> to vector<16x32xf32>
    %272 = arith.mulf %270, %271 : vector<16x32xf32>
    %273 = vector.broadcast %168 : vector<1x32xf32> to vector<16x32xf32>
    %274 = arith.addf %272, %273 : vector<16x32xf32>
    %cst_83 = arith.constant dense<0.000000e+00> : vector<2x32xf32>
    %275 = tpu.matmul %5, %274, %cst_83 {dimension_numbers = #tpu.dot_dimension_numbers<[1], [0], [0], [1], [0, 0, 1, 1], [], []>} : vector<2x16xf32>, vector<16x32xf32>, vector<2x32xf32> -> vector<2x32xf32>
    %276 = arith.mulf %275, %275 : vector<2x32xf32>
    %cst_84 = arith.constant dense<0.000000e+00> : vector<2xf32>
    %277 = vector.multi_reduction <add>, %276, %cst_84 [1] : vector<2x32xf32> to vector<2xf32>
    %278 = vector.shape_cast %277 : vector<2xf32> to vector<2x1xf32>
    %279 = math.sqrt %278 : vector<2x1xf32>
    %cst_85 = arith.constant 9.99999996E-13 : f32
    %280 = vector.broadcast %cst_85 : f32 to vector<2x1xf32>
    %281 = arith.maximumf %279, %280 : vector<2x1xf32>
    %282 = vector.broadcast %281 : vector<2x1xf32> to vector<2x32xf32>
    %283 = arith.divf %275, %282 : vector<2x32xf32>
    %c0_86 = arith.constant 0 : index
    %c0_87 = arith.constant 0 : index
    %c0_88 = arith.constant 0 : index
    %284 = vector.load %arg9[%c0_86, %c0_87, %c0_88] : memref<1x2x32xf32, #tpu.memory_space<vmem>>, vector<1x2x32xf32>
    %285 = vector.shape_cast %284 : vector<1x2x32xf32> to vector<2x32xf32>
    %286 = vector.shape_cast %283 : vector<2x32xf32> to vector<1x2x32xf32>
    tpu.vector_store %arg9[%c0_86, %c0_87, %c0_88], %286 {strides = array<i32>} : memref<1x2x32xf32, #tpu.memory_space<vmem>>, vector<1x2x32xf32>,
    return
  }
  func.func @transform_0(%arg0: i32) -> (i32, i32, i32) {
    %c0_i32 = arith.constant 0 : i32
    %c0_i32_0 = arith.constant 0 : i32
    %c0_i32_1 = arith.constant 0 : i32
    return %arg0, %c0_i32, %c0_i32_0 : i32, i32, i32
  }
  func.func @transform_1(%arg0: i32) -> (i32, i32, i32) {
    %c0_i32 = arith.constant 0 : i32
    %c0_i32_0 = arith.constant 0 : i32
    %c0_i32_1 = arith.constant 0 : i32
    return %arg0, %c0_i32, %c0_i32_0 : i32, i32, i32
  }
  func.func @transform_2(%arg0: i32) -> (i32, i32, i32) {
    %c0_i32 = arith.constant 0 : i32
    %c0_i32_0 = arith.constant 0 : i32
    %c0_i32_1 = arith.constant 0 : i32
    return %arg0, %c0_i32, %c0_i32_0 : i32, i32, i32
  }
  func.func @transform_3(%arg0: i32) -> (i32, i32) {
    %c0_i32 = arith.constant 0 : i32
    %c0_i32_0 = arith.constant 0 : i32
    %c0_i32_1 = arith.constant 0 : i32
    return %c0_i32, %c0_i32_0 : i32, i32
  }
  func.func @transform_4(%arg0: i32) -> (i32, i32, i32) {
    %c0_i32 = arith.constant 0 : i32
    %c0_i32_0 = arith.constant 0 : i32
    %c0_i32_1 = arith.constant 0 : i32
    %c0_i32_2 = arith.constant 0 : i32
    return %c0_i32, %c0_i32_0, %c0_i32_1 : i32, i32, i32
  }
  func.func @transform_5(%arg0: i32) -> (i32, i32, i32) {
    %c0_i32 = arith.constant 0 : i32
    %c0_i32_0 = arith.constant 0 : i32
    %c0_i32_1 = arith.constant 0 : i32
    %c0_i32_2 = arith.constant 0 : i32
    return %c0_i32, %c0_i32_0, %c0_i32_1 : i32, i32, i32
  }
  func.func @transform_6(%arg0: i32) -> (i32, i32, i32) {
    %c0_i32 = arith.constant 0 : i32
    %c0_i32_0 = arith.constant 0 : i32
    %c0_i32_1 = arith.constant 0 : i32
    %c0_i32_2 = arith.constant 0 : i32
    return %c0_i32, %c0_i32_0, %c0_i32_1 : i32, i32, i32
  }
  func.func @transform_7(%arg0: i32) -> (i32, i32, i32) {
    %c0_i32 = arith.constant 0 : i32
    %c0_i32_0 = arith.constant 0 : i32
    %c0_i32_1 = arith.constant 0 : i32
    %c0_i32_2 = arith.constant 0 : i32
    return %c0_i32, %c0_i32_0, %c0_i32_1 : i32, i32, i32
  }
  func.func @transform_8(%arg0: i32) -> (i32, i32, i32) {
    %c0_i32 = arith.constant 0 : i32
    %c0_i32_0 = arith.constant 0 : i32
    %c0_i32_1 = arith.constant 0 : i32
    return %arg0, %c0_i32, %c0_i32_0 : i32, i32, i32
  }
}

</mosaic_0001>

<bundles_post_ra>
// kernel: tile.9
= control target key start
LH: loop header
LB: loop body
LE: loop exit
PB: predicated region body
PF: predicated region fallthrough
CT: control target
= control target key end

     0   :  { %vm1027_vm0 = vcmask 1047556   ;;  %s1385_s22 = smov 16   ;;  %vm1029_vm1 = vcmask 130048   ;;  %vm1102_vm2 = vcmask 261248   ;;  %s1653_s0 = inlined_call_operand.vmem [shape: pred[2,2,16,2,16], index: 0, kind: input, shape index: {}]   ;;  %s1654_s1 = inlined_call_operand.vmem [shape: pred[2,32,32], index: 1, kind: output, shape index: {}]  }
   0x1   :  { %v1369_v0 = vld [vmem:[%s1653_s0 + $0x7] sm:$0x1]  ;;  %v1370_v1 = vld [vmem:[%s1653_s0 + $0x6] sm:$0x1]  ;;  %v1371_v2 = vld [vmem:[%s1653_s0 + $0x5] sm:$0x1] }
   0x2   :  { %v911_v3 = vunpack.c.0.s8 %v1369_v0  ;;  %v927_v4 = vunpack.c.0.s8 %v1370_v1  ;;  %v943_v5 = vunpack.c.0.s8 %v1371_v2  ;;  %v1372_v6 = vld [vmem:[%s1653_s0 + $0x4] sm:$0x1]  ;;  %v1373_v7 = vld [vmem:[%s1653_s0 + $0x3] sm:$0x1]  ;;  %v1374_v8 = vld [vmem:[%s1653_s0 + $0x2] sm:$0x1] }
   0x3   :  { %v959_v9 = vunpack.c.0.s8 %v1372_v6  ;;  %v975_v10 = vunpack.c.0.s8 %v1373_v7  ;;  %v991_v11 = vunpack.c.0.s8 %v1374_v8  ;;  %v1375_v12 = vld [vmem:[%s1653_s0 + $0x1] sm:$0x1]  ;;  %v1019_v13 = vld [vmem:[%s1653_s0] sm:$0x1]  ;;  %v1361_v16 = vld [vmem:[%s1653_s0 + $0xf] sm:$0x1] }
   0x4   :  { %916 = vst [vmem:[#allocation1 + $0x38] sm:$0xf] %v911_v3  ;;  %932 = vst [vmem:[#allocation1 + $0x30] sm:$0xf] %v927_v4  ;;  %v1006_v14 = vunpack.c.0.s8 %v1375_v12  ;;  %v1020_v15 = vunpack.c.0.s8 %v1019_v13  ;;  %v1362_v17 = vld [vmem:[%s1653_s0 + $0xe] sm:$0x1]  ;;  %v783_v19 = vunpack.c.0.s8 %v1361_v16 }
   0x5   :  { %948 = vst [vmem:[#allocation1 + $0x28] sm:$0xf] %v943_v5  ;;  %v1363_v18 = vld [vmem:[%s1653_s0 + $0xd] sm:$0x1]  ;;  %964 = vst [vmem:[#allocation1 + $0x20] sm:$0xf] %v959_v9  ;;  %v799_v20 = vunpack.c.0.s8 %v1362_v17 }
   0x6   :  { %980 = vst [vmem:[#allocation1 + $0x18] sm:$0xf] %v975_v10  ;;  %996 = vst [vmem:[#allocation1 + $0x10] sm:$0xf] %v991_v11  ;;  %v815_v21 = vunpack.c.0.s8 %v1363_v18  ;;  %v1364_v22 = vld [vmem:[%s1653_s0 + $0xc] sm:$0x1] }
   0x7   :  { %v1365_v23 = vld [vmem:[%s1653_s0 + $0xb] sm:$0x1]  ;;  %v1366_v24 = vld [vmem:[%s1653_s0 + $0xa] sm:$0x1]  ;;  %1011 = vst [vmem:[#allocation1 + $0x8] sm:$0xf] %v1006_v14  ;;  %v831_v25 = vunpack.c.0.s8 %v1364_v22 }
   0x8   :  { %1024 = vst [vmem:[#allocation1] sm:$0xf] %v1020_v15  ;;  %v847_v26 = vunpack.c.0.s8 %v1365_v23  ;;  %v863_v27 = vunpack.c.0.s8 %v1366_v24  ;;  %v1367_v28 = vld [vmem:[%s1653_s0 + $0x9] sm:$0x1]  ;;  %v1368_v29 = vld [vmem:[%s1653_s0 + $0x8] sm:$0x1] }
   0x9   :  { %v1337_v30 = vld [vmem:[%s1653_s0 + $0x27] sm:$0x1]  ;;  %788 = vst [vmem:[#allocation1 + $0x78] sm:$0xf] %v783_v19  ;;  %804 = vst [vmem:[#allocation1 + $0x70] sm:$0xf] %v799_v20  ;;  %v879_v31 = vunpack.c.0.s8 %v1367_v28  ;;  %v895_v32 = vunpack.c.0.s8 %v1368_v29 }
   0xa   :  { %820 = vst [vmem:[#allocation1 + $0x68] sm:$0xf] %v815_v21  ;;  %v399_v33 = vunpack.c.0.s8 %v1337_v30  ;;  %v1338_v34 = vld [vmem:[%s1653_s0 + $0x26] sm:$0x1]  ;;  %v1339_v35 = vld [vmem:[%s1653_s0 + $0x25] sm:$0x1] }
   0xb   :  { %v1340_v36 = vld [vmem:[%s1653_s0 + $0x24] sm:$0x1]  ;;  %836 = vst [vmem:[#allocation1 + $0x60] sm:$0xf] %v831_v25  ;;  %852 = vst [vmem:[#allocation1 + $0x58] sm:$0xf] %v847_v26  ;;  %v415_v37 = vunpack.c.0.s8 %v1338_v34  ;;  %v431_v38 = vunpack.c.0.s8 %v1339_v35 }
   0xc   :  { %868 = vst [vmem:[#allocation1 + $0x50] sm:$0xf] %v863_v27  ;;  %v447_v39 = vunpack.c.0.s8 %v1340_v36  ;;  %v1341_v40 = vld [vmem:[%s1653_s0 + $0x23] sm:$0x1]  ;;  %v1342_v41 = vld [vmem:[%s1653_s0 + $0x22] sm:$0x1] }
   0xd   :  { %v1343_v42 = vld [vmem:[%s1653_s0 + $0x21] sm:$0x1]  ;;  %884 = vst [vmem:[#allocation1 + $0x48] sm:$0xf] %v879_v31  ;;  %900 = vst [vmem:[#allocation1 + $0x40] sm:$0xf] %v895_v32  ;;  %v463_v43 = vunpack.c.0.s8 %v1341_v40  ;;  %v479_v44 = vunpack.c.0.s8 %v1342_v41 }
   0xe   :  { %404 = vst [vmem:[#allocation1 + $0x138] sm:$0xf] %v399_v33  ;;  %v495_v45 = vunpack.c.0.s8 %v1343_v42  ;;  %v1344_v46 = vld [vmem:[%s1653_s0 + $0x20] sm:$0x1]  ;;  %v1329_v47 = vld [vmem:[%s1653_s0 + $0x2f] sm:$0x1] }
   0xf   :  { %v1330_v48 = vld [vmem:[%s1653_s0 + $0x2e] sm:$0x1]  ;;  %420 = vst [vmem:[#allocation1 + $0x130] sm:$0xf] %v415_v37  ;;  %436 = vst [vmem:[#allocation1 + $0x128] sm:$0xf] %v431_v38  ;;  %v511_v49 = vunpack.c.0.s8 %v1344_v46  ;;  %v271_v50 = vunpack.c.0.s8 %v1329_v47 }
  0x10   :  { %452 = vst [vmem:[#allocation1 + $0x120] sm:$0xf] %v447_v39  ;;  %v287_v51 = vunpack.c.0.s8 %v1330_v48  ;;  %v1331_v52 = vld [vmem:[%s1653_s0 + $0x2d] sm:$0x1]  ;;  %v1332_v53 = vld [vmem:[%s1653_s0 + $0x2c] sm:$0x1] }
  0x11   :  { %v1333_v54 = vld [vmem:[%s1653_s0 + $0x2b] sm:$0x1]  ;;  %468 = vst [vmem:[#allocation1 + $0x118] sm:$0xf] %v463_v43  ;;  %484 = vst [vmem:[#allocation1 + $0x110] sm:$0xf] %v479_v44  ;;  %v303_v55 = vunpack.c.0.s8 %v1331_v52  ;;  %v319_v56 = vunpack.c.0.s8 %v1332_v53 }
  0x12   :  { %500 = vst [vmem:[#allocation1 + $0x108] sm:$0xf] %v495_v45  ;;  %v335_v57 = vunpack.c.0.s8 %v1333_v54  ;;  %v1334_v58 = vld [vmem:[%s1653_s0 + $0x2a] sm:$0x1]  ;;  %v1335_v59 = vld [vmem:[%s1653_s0 + $0x29] sm:$0x1] }
  0x13   :  { %v1336_v60 = vld [vmem:[%s1653_s0 + $0x28] sm:$0x1]  ;;  %v1097_v61 = vld [vmem:[#allocation1 + $0x1] ss:$8 sm:$0xf0]   ;;  %v351_v62 = vunpack.c.0.s8 %v1334_v58  ;;  %v367_v63 = vunpack.c.0.s8 %v1335_v59 }
  0x14   :  { %516 = vst [vmem:[#allocation1 + $0x100] sm:$0xf] %v511_v49  ;;  %276 = vst [vmem:[#allocation1 + $0x178] sm:$0xf] %v271_v50  ;;  %v383_v0 = vunpack.c.0.s8 %v1336_v60  ;;  %v1353_v1 = vld [vmem:[%s1653_s0 + $0x17] sm:$0x1] }
  0x15   :  { %292 = vst [vmem:[#allocation1 + $0x170] sm:$0xf] %v287_v51  ;;  %v1095_v2 = vld [vmem:[#allocation1 + $0x1] ss:$8 sm:$0xf]   ;;  %v655_v3 = vunpack.c.0.s8 %v1353_v1 }
  0x16   :  { %308 = vst [vmem:[#allocation1 + $0x168] sm:$0xf] %v303_v55  ;;  %324 = vst [vmem:[#allocation1 + $0x160] sm:$0xf] %v319_v56  ;;  %v1354_v4 = vld [vmem:[%s1653_s0 + $0x16] sm:$0x1]  ;;  %v1099_v5 = vsel %vm1027_vm0, %v1097_v61, %v1095_v2 }
  0x17   :  { %340 = vst [vmem:[#allocation1 + $0x158] sm:$0xf] %v335_v57  ;;  %356 = vst [vmem:[#allocation1 + $0x150] sm:$0xf] %v351_v62  ;;  %v671_v6 = vunpack.c.0.s8 %v1354_v4  ;;  %v1355_v7 = vld [vmem:[%s1653_s0 + $0x15] sm:$0x1]  ;;  %1100 = vrot.lane.b32.xlu0 %v1099_v5, %s1385_s22 }
  0x18   :  { %372 = vst [vmem:[#allocation1 + $0x148] sm:$0xf] %v367_v63  ;;  %388 = vst [vmem:[#allocation1 + $0x140] sm:$0xf] %v383_v0  ;;  %v1356_v8 = vld [vmem:[%s1653_s0 + $0x14] sm:$0x1]  ;;  %v687_v11 = vunpack.c.0.s8 %v1355_v7 }
  0x19   :  { %v1357_v9 = vld [vmem:[%s1653_s0 + $0x13] sm:$0x1]  ;;  %v1118_v10 = vld [vmem:[#allocation1 + $0x41] ss:$8 sm:$0xf0]   ;;  %v703_v12 = vunpack.c.0.s8 %v1356_v8 }
  0x1a   :  { %660 = vst [vmem:[#allocation1 + $0xb8] sm:$0xf] %v655_v3  ;;  %v719_v13 = vunpack.c.0.s8 %v1357_v9  ;;  %v1358_v14 = vld [vmem:[%s1653_s0 + $0x12] sm:$0x1]  ;;  %676 = vst [vmem:[#allocation1 + $0xb0] sm:$0xf] %v671_v6 }
  0x1b   :  { %v1116_v15 = vld [vmem:[#allocation1 + $0x41] ss:$8 sm:$0xf]   ;;  %v735_v16 = vunpack.c.0.s8 %v1358_v14  ;;  %692 = vst [vmem:[#allocation1 + $0xa8] sm:$0xf] %v687_v11 }
  0x1c   :  { %v1359_v17 = vld [vmem:[%s1653_s0 + $0x11] sm:$0x1]  ;;  %v1120_v18 = vsel %vm1027_vm0, %v1118_v10, %v1116_v15  ;;  %708 = vst [vmem:[#allocation1 + $0xa0] sm:$0xf] %v703_v12  ;;  %724 = vst [vmem:[#allocation1 + $0x98] sm:$0xf] %v719_v13 }
  0x1d   :  { %v1107_v19 = vld [vmem:[#allocation1 + $0x101] ss:$8 sm:$0xf0]   ;;  %v751_v20 = vunpack.c.0.s8 %v1359_v17  ;;  %v1360_v21 = vld [vmem:[%s1653_s0 + $0x10] sm:$0x1]  ;;  %1121 = vrot.lane.b32.xlu1 %v1120_v18, %s1385_s22 }
  0x1e   :  { %740 = vst [vmem:[#allocation1 + $0x90] sm:$0xf] %v735_v16  ;;  %v767_v22 = vunpack.c.0.s8 %v1360_v21  ;;  %v1321_v23 = vld [vmem:[%s1653_s0 + $0x37] sm:$0x1]  ;;  %v1322_v24 = vld [vmem:[%s1653_s0 + $0x36] sm:$0x1] }
  0x1f   :  { %v1323_v25 = vld [vmem:[%s1653_s0 + $0x35] sm:$0x1]  ;;  %v1105_v26 = vld [vmem:[#allocation1 + $0x101] ss:$8 sm:$0xf]   ;;  %v143_v27 = vunpack.c.0.s8 %v1321_v23  ;;  %v159_v28 = vunpack.c.0.s8 %v1322_v24 }
  0x20   :  { %756 = vst [vmem:[#allocation1 + $0x88] sm:$0xf] %v751_v20  ;;  %v175_v29 = vunpack.c.0.s8 %v1323_v25  ;;  %v1324_v30 = vld [vmem:[%s1653_s0 + $0x34] sm:$0x1]  ;;  %v1109_v31 = vsel %vm1027_vm0, %v1107_v19, %v1105_v26  ;;  %772 = vst [vmem:[#allocation1 + $0x80] sm:$0xf] %v767_v22 }
  0x21   :  { %v1129_v32 = vld [vmem:[#allocation1 + $0x141] ss:$8 sm:$0xf0]   ;;  %v191_v33 = vunpack.c.0.s8 %v1324_v30  ;;  %v1325_v34 = vld [vmem:[%s1653_s0 + $0x33] sm:$0x1]  ;;  %1110 = vrot.lane.b32.xlu0 %v1109_v31, %s1385_s22 }
  0x22   :  { %v1127_v35 = vld [vmem:[#allocation1 + $0x141] ss:$8 sm:$0xf]   ;;  %148 = vst [vmem:[#allocation1 + $0x1b8] sm:$0xf] %v143_v27  ;;  %v207_v36 = vunpack.c.0.s8 %v1325_v34 }
  0x23   :  { %164 = vst [vmem:[#allocation1 + $0x1b0] sm:$0xf] %v159_v28  ;;  %180 = vst [vmem:[#allocation1 + $0x1a8] sm:$0xf] %v175_v29  ;;  %v1326_v37 = vld [vmem:[%s1653_s0 + $0x32] sm:$0x1]  ;;  %v1131_v38 = vsel %vm1027_vm0, %v1129_v32, %v1127_v35 }
  0x24   :  { %196 = vst [vmem:[#allocation1 + $0x1a0] sm:$0xf] %v191_v33  ;;  %v223_v39 = vunpack.c.0.s8 %v1326_v37  ;;  %v1327_v40 = vld [vmem:[%s1653_s0 + $0x31] sm:$0x1]  ;;  %v1328_v41 = vld [vmem:[%s1653_s0 + $0x30] sm:$0x1]  ;;  %1132 = vrot.lane.b32.xlu1 %v1131_v38, %s1385_s22 }
  0x25   :  { %v1345_v42 = vld [vmem:[%s1653_s0 + $0x1f] sm:$0x1]  ;;  %212 = vst [vmem:[#allocation1 + $0x198] sm:$0xf] %v207_v36  ;;  %v239_v43 = vunpack.c.0.s8 %v1327_v40  ;;  %v255_v44 = vunpack.c.0.s8 %v1328_v41  ;;  %v1346_v46 = vld [vmem:[%s1653_s0 + $0x1e] sm:$0x1] }
  0x26   :  { %v527_v45 = vunpack.c.0.s8 %v1345_v42  ;;  %v1347_v47 = vld [vmem:[%s1653_s0 + $0x1d] sm:$0x1]  ;;  %v1348_v48 = vld [vmem:[%s1653_s0 + $0x1c] sm:$0x1]  ;;  %228 = vst [vmem:[#allocation1 + $0x190] sm:$0xf] %v223_v39  ;;  %v543_v50 = vunpack.c.0.s8 %v1346_v46 }
  0x27   :  { %v1140_v49 = vld [vmem:[#allocation1 + $0x81] ss:$8 sm:$0xf0]   ;;  %v559_v51 = vunpack.c.0.s8 %v1347_v47  ;;  %v575_v52 = vunpack.c.0.s8 %v1348_v48  ;;  %v1349_v53 = vld [vmem:[%s1653_s0 + $0x1b] sm:$0x1] }
  0x28   :  { %244 = vst [vmem:[#allocation1 + $0x188] sm:$0xf] %v239_v43  ;;  %260 = vst [vmem:[#allocation1 + $0x180] sm:$0xf] %v255_v44  ;;  %v591_v54 = vunpack.c.0.s8 %v1349_v53  ;;  %v1350_v55 = vld [vmem:[%s1653_s0 + $0x1a] sm:$0x1] }
  0x29   :  { %532 = vst [vmem:[#allocation1 + $0xf8] sm:$0xf] %v527_v45  ;;  %v1351_v56 = vld [vmem:[%s1653_s0 + $0x19] sm:$0x1]  ;;  %v1352_v57 = vld [vmem:[%s1653_s0 + $0x18] sm:$0x1]  ;;  %v607_v58 = vunpack.c.0.s8 %v1350_v55 }
  0x2a   :  { %548 = vst [vmem:[#allocation1 + $0xf0] sm:$0xf] %v543_v50  ;;  %564 = vst [vmem:[#allocation1 + $0xe8] sm:$0xf] %v559_v51  ;;  %v623_v59 = vunpack.c.0.s8 %v1351_v56  ;;  %v639_v60 = vunpack.c.0.s8 %v1352_v57  ;;  %v1313_v61 = vld [vmem:[%s1653_s0 + $0x3f] sm:$0x1] }
  0x2b   :  { %580 = vst [vmem:[#allocation1 + $0xe0] sm:$0xf] %v575_v52  ;;  %v1314_v62 = vld [vmem:[%s1653_s0 + $0x3e] sm:$0x1]  ;;  %v1315_v63 = vld [vmem:[%s1653_s0 + $0x3d] sm:$0x1]  ;;  %v15_v1 = vunpack.c.0.s8 %v1313_v61 }
  0x2c   :  { %v1138_v0 = vld [vmem:[#allocation1 + $0x81] ss:$8 sm:$0xf]   ;;  %596 = vst [vmem:[#allocation1 + $0xd8] sm:$0xf] %v591_v54  ;;  %v31_v2 = vunpack.c.0.s8 %v1314_v62  ;;  %v47_v3 = vunpack.c.0.s8 %v1315_v63  ;;  %v1386_v53 = vmov 0  }
  0x2d   :  { %v1316_v4 = vld [vmem:[%s1653_s0 + $0x3c] sm:$0x1]  ;;  %v1142_v5 = vsel %vm1027_vm0, %v1140_v49, %v1138_v0  ;;  %612 = vst [vmem:[#allocation1 + $0xd0] sm:$0xf] %v607_v58  ;;  %628 = vst [vmem:[#allocation1 + $0xc8] sm:$0xf] %v623_v59 }
  0x2e   :  { %644 = vst [vmem:[#allocation1 + $0xc0] sm:$0xf] %v639_v60  ;;  %v63_v6 = vunpack.c.0.s8 %v1316_v4  ;;  %v1317_v7 = vld [vmem:[%s1653_s0 + $0x3b] sm:$0x1]  ;;  %v1318_v8 = vld [vmem:[%s1653_s0 + $0x3a] sm:$0x1]  ;;  %1143 = vrot.lane.b32.xlu0 %v1142_v5, %s1385_s22 }
  0x2f   :  { %v1319_v9 = vld [vmem:[%s1653_s0 + $0x39] sm:$0x1]  ;;  %20 = vst [vmem:[#allocation1 + $0x1f8] sm:$0xf] %v15_v1  ;;  %36 = vst [vmem:[#allocation1 + $0x1f0] sm:$0xf] %v31_v2  ;;  %v79_v11 = vunpack.c.0.s8 %v1317_v7  ;;  %v95_v12 = vunpack.c.0.s8 %v1318_v8 }
  0x30   :  { %v1151_v10 = vld [vmem:[#allocation1 + $0x181] ss:$8 sm:$0xf0]   ;;  %52 = vst [vmem:[#allocation1 + $0x1e8] sm:$0xf] %v47_v3  ;;  %v111_v13 = vunpack.c.0.s8 %v1319_v9 }
  0x31   :  { %v1320_v14 = vld [vmem:[%s1653_s0 + $0x38] sm:$0x1]  ;;  %68 = vst [vmem:[#allocation1 + $0x1e0] sm:$0xf] %v63_v6  ;;  %84 = vst [vmem:[#allocation1 + $0x1d8] sm:$0xf] %v79_v11 }
  0x32   :  { %v127_v15 = vunpack.c.0.s8 %v1320_v14  ;;  %v1025_v16 = vld [vmem:[#allocation1] ss:$8 sm:$0xf]   ;;  %100 = vst [vmem:[#allocation1 + $0x1d0] sm:$0xf] %v95_v12 }
  0x33   :  { %v1026_v17 = vld [vmem:[#allocation1] ss:$8 sm:$0xf0]   ;;  %116 = vst [vmem:[#allocation1 + $0x1c8] sm:$0xf] %v111_v13 }
  0x34   :  { %v1028_v18 = vsel %vm1027_vm0, %v1026_v17, %v1025_v16  ;;  %v1032_v19 = vld [vmem:[#allocation1 + $0x40] ss:$8 sm:$0xf]   ;;  %v1149_v21 = vld [vmem:[#allocation1 + $0x181] ss:$8 sm:$0xf]  }
  0x35   :  { %v1034_v20 = vld [vmem:[#allocation1 + $0x40] ss:$8 sm:$0xf0]   ;;  %132 = vst [vmem:[#allocation1 + $0x1c0] sm:$0xf] %v127_v15  ;;  %1030 = vst.msk [vmem:[#allocation0] sm:$0xff] %vm1029_vm1, %v1028_v18   ;;  %v1153_v24 = vsel %vm1027_vm0, %v1151_v10, %v1149_v21 }
  0x36   :  { %v1036_v22 = vsel %vm1027_vm0, %v1034_v20, %v1032_v19  ;;  %v1059_v23 = vld [vmem:[#allocation1 + $0x100] ss:$8 sm:$0xf]   ;;  %v1162_v25 = vld [vmem:[#allocation1 + $0xc1] ss:$8 sm:$0xf0]   ;;  %1154 = vrot.lane.b32.xlu1 %v1153_v24, %s1385_s22 }
  0x37   :  { %1039 = vst.msk [vmem:[#allocation0 + $0x8] sm:$0xff] %vm1029_vm1, %v1036_v22   ;;  %v1061_v26 = vld [vmem:[#allocation1 + $0x100] ss:$8 sm:$0xf0]  }
  0x38   :  { %v1063_v27 = vsel %vm1027_vm0, %v1061_v26, %v1059_v23  ;;  %v1068_v28 = vld [vmem:[#allocation1 + $0x140] ss:$8 sm:$0xf]   ;;  %v1160_v30 = vld [vmem:[#allocation1 + $0xc1] ss:$8 sm:$0xf]  }
  0x39   :  { %v1070_v29 = vld [vmem:[#allocation1 + $0x140] ss:$8 sm:$0xf0]   ;;  %1066 = vst.msk [vmem:[#allocation0 + $0x20] sm:$0xff] %vm1029_vm1, %v1063_v27   ;;  %v1164_v33 = vsel %vm1027_vm0, %v1162_v25, %v1160_v30 }
  0x3a   :  { %v1072_v31 = vsel %vm1027_vm0, %v1070_v29, %v1068_v28  ;;  %v1041_v32 = vld [vmem:[#allocation1 + $0x80] ss:$8 sm:$0xf]   ;;  %1165 = vrot.lane.b32.xlu0 %v1164_v33, %s1385_s22  ;;  %v1173_v36 = vld [vmem:[#allocation1 + $0x1c1] ss:$8 sm:$0xf0]  }
  0x3b   :  { %1075 = vst.msk [vmem:[#allocation0 + $0x28] sm:$0xff] %vm1029_vm1, %v1072_v31   ;;  %v1043_v34 = vld [vmem:[#allocation1 + $0x80] ss:$8 sm:$0xf0]  }
  0x3c   :  { %v1077_v35 = vld [vmem:[#allocation1 + $0x180] ss:$8 sm:$0xf]   ;;  %v1045_v37 = vsel %vm1027_vm0, %v1043_v34, %v1041_v32  ;;  %v1171_v42 = vld [vmem:[#allocation1 + $0x1c1] ss:$8 sm:$0xf]  }
  0x3d   :  { %v1079_v38 = vld [vmem:[#allocation1 + $0x180] ss:$8 sm:$0xf0]   ;;  %1048 = vst.msk [vmem:[#allocation0 + $0x10] sm:$0xff] %vm1029_vm1, %v1045_v37   ;;  %v1175_v45 = vsel %vm1027_vm0, %v1173_v36, %v1171_v42 }
  0x3e   :  { %v1081_v39 = vsel %vm1027_vm0, %v1079_v38, %v1077_v35  ;;  %v1050_v40 = vld [vmem:[#allocation1 + $0xc0] ss:$8 sm:$0xf]   ;;  %1176 = vrot.lane.b32.xlu1 %v1175_v45, %s1385_s22 }
  0x3f   :  { %v1052_v41 = vld [vmem:[#allocation1 + $0xc0] ss:$8 sm:$0xf0]   ;;  %1084 = vst.msk [vmem:[#allocation0 + $0x30] sm:$0xff] %vm1029_vm1, %v1081_v39  }
  0x40   :  { %v1054_v43 = vsel %vm1027_vm0, %v1052_v41, %v1050_v40  ;;  %v1086_v44 = vld [vmem:[#allocation1 + $0x1c0] ss:$8 sm:$0xf]  }
  0x41   :  { %1057 = vst.msk [vmem:[#allocation0 + $0x18] sm:$0xff] %vm1029_vm1, %v1054_v43   ;;  %v1088_v46 = vld [vmem:[#allocation1 + $0x1c0] ss:$8 sm:$0xf0]  }
  0x42   :  { %v1090_v47 = vsel %vm1027_vm0, %v1088_v46, %v1086_v44 }
  0x43   :  { %1093 = vst.msk [vmem:[#allocation0 + $0x38] sm:$0xff] %vm1029_vm1, %v1090_v47  }
  0x89   :  { %v1101_v48 = vpop.permute.xlu0 %1100  }
  0x8a   :  { %1103 = vst.msk [vmem:[#allocation0] sm:$0xff] %vm1102_vm2, %v1101_v48  }
  0x8f   :  { %v1122_v49 = vpop.permute.xlu1 %1121  }
  0x90   :  { %1125 = vst.msk [vmem:[#allocation0 + $0x8] sm:$0xff] %vm1102_vm2, %v1122_v49  }
  0x91   :  { %v1185_v51 = vld [vmem:[#allocation0] sm:$0xff] }
  0x92   :  { %v1187_v54 = vpack.c.b16 %v1386_v53, %v1185_v51 }
  0x93   :  { %v1111_v50 = vpop.permute.xlu0 %1110  }
  0x94   :  { %1114 = vst.msk [vmem:[#allocation0 + $0x20] sm:$0xff] %vm1102_vm2, %v1111_v50   ;;  %v1188_v55 = vpack.c.b8 %v1386_v53, %v1187_v54 }
  0x96   :  { %v1133_v52 = vpop.permute.xlu1 %1132   ;;  %1189 = vst [vmem:[%s1654_s1] sm:$0x3] %v1188_v55 }
  0x97   :  { %1136 = vst.msk [vmem:[#allocation0 + $0x28] sm:$0xff] %vm1102_vm2, %v1133_v52   ;;  %v1191_v56 = vld [vmem:[#allocation0 + $0x8] sm:$0xff] }
  0x98   :  { %v1194_v57 = vpack.c.b16 %v1386_v53, %v1191_v56 }
  0x9a   :  { %v1195_v58 = vpack.c.b8 %v1386_v53, %v1194_v57 }
  0x9b   :  { %v1214_v59 = vld [vmem:[#allocation0 + $0x20] sm:$0xff] }
  0x9c   :  { %v1218_v61 = vpack.c.b16 %v1386_v53, %v1214_v59  ;;  %1376 = vst [vmem:[%s1654_s1 + $0x2] sm:$0x3] %v1195_v58 }
  0x9e   :  { %v1222_v62 = vld [vmem:[#allocation0 + $0x28] sm:$0xff]  ;;  %v1219_v63 = vpack.c.b8 %v1386_v53, %v1218_v61 }
  0x9f   :  { %v1226_v0 = vpack.c.b16 %v1386_v53, %v1222_v62 }
  0xa0   :  { %v1144_v60 = vpop.permute.xlu0 %1143   ;;  %1379 = vst [vmem:[%s1654_s1 + $0x8] sm:$0x3] %v1219_v63 }
  0xa1   :  { %1147 = vst.msk [vmem:[#allocation0 + $0x10] sm:$0xff] %vm1102_vm2, %v1144_v60   ;;  %v1227_v1 = vpack.c.b8 %v1386_v53, %v1226_v0 }
  0xa3   :  { %1380 = vst [vmem:[%s1654_s1 + $0xa] sm:$0x3] %v1227_v1 }
  0xa8   :  { %v1155_v2 = vpop.permute.xlu1 %1154   ;;  %v1198_v3 = vld [vmem:[#allocation0 + $0x10] sm:$0xff] }
  0xa9   :  { %1158 = vst.msk [vmem:[#allocation0 + $0x30] sm:$0xff] %vm1102_vm2, %v1155_v2   ;;  %v1202_v5 = vpack.c.b16 %v1386_v53, %v1198_v3 }
  0xab   :  { %v1203_v6 = vpack.c.b8 %v1386_v53, %v1202_v5 }
  0xac   :  { %v1166_v4 = vpop.permute.xlu0 %1165  }
  0xad   :  { %1169 = vst.msk [vmem:[#allocation0 + $0x18] sm:$0xff] %vm1102_vm2, %v1166_v4   ;;  %1377 = vst [vmem:[%s1654_s1 + $0x4] sm:$0x3] %v1203_v6 }
  0xb0   :  { %v1177_v7 = vpop.permute.xlu1 %1176   ;;  %v1230_v8 = vld [vmem:[#allocation0 + $0x30] sm:$0xff] }
  0xb1   :  { %1180 = vst.msk [vmem:[#allocation0 + $0x38] sm:$0xff] %vm1102_vm2, %v1177_v7   ;;  %v1234_v9 = vpack.c.b16 %v1386_v53, %v1230_v8 }
  0xb3   :  { %v1235_v10 = vpack.c.b8 %v1386_v53, %v1234_v9 }
  0xb4   :  { %v1206_v11 = vld [vmem:[#allocation0 + $0x18] sm:$0xff] }
  0xb5   :  { %v1210_v12 = vpack.c.b16 %v1386_v53, %v1206_v11  ;;  %1381 = vst [vmem:[%s1654_s1 + $0xc] sm:$0x3] %v1235_v10 }
  0xb7   :  { %v1211_v13 = vpack.c.b8 %v1386_v53, %v1210_v12 }
  0xb8   :  { %v1238_v14 = vld [vmem:[#allocation0 + $0x38] sm:$0xff] }
  0xb9   :  { %1378 = vst [vmem:[%s1654_s1 + $0x6] sm:$0x3] %v1211_v13  ;;  %v1242_v15 = vpack.c.b16 %v1386_v53, %v1238_v14 }
  0xbb   :  { %v1243_v16 = vpack.c.b8 %v1386_v53, %v1242_v15 }
  0xbd   :  { %1382 = vst [vmem:[%s1654_s1 + $0xe] sm:$0x3] %v1243_v16 }

// kernel: codebert_contrastive_forward.3
= control target key start
LH: loop header
LB: loop body
LE: loop exit
PB: predicated region body
PF: predicated region fallthrough
CT: control target
= control target key end

     0   :  { %vm10_vm0 = vcmask 261120   ;;  %v140_v0 = vmov 0.0   ;;  %vm141_vm1 = vmmov 0   ;;  %vm94_vm2 = vcmask 9216   ;;  %s161_s0 = inlined_call_operand.vmem [shape: f32[2,2,32], index: 0, kind: input, shape index: {}]   ;;  %s162_s1 = inlined_call_operand.vmem [shape: f32[2,3], index: 1, kind: output, shape index: {}]  }
   0x1   :  { %129 = vmatprep.subr.mxu0 %v140_v0  ;;  %v8_v1 = vld [vmem:[%s161_s0] sm:$0x3]  ;;  %131 = vmatprep.mubr.msk.f32.mxu0 %vm141_vm1, %v140_v0  ;;  %v9_v2 = vld [vmem:[%s161_s0 + $0x2] sm:$0x3]  ;;  %vm89_vm3 = vcmask 254976   ;;  %vm108_vm4 = vcmask 1041408  }
   0x2   :  { %130 = vmatpush3.xpose.msk.msra.mxu0 %vm10_vm0, %v8_v1  ;;  %v88_v7 = vmul.f32 %v9_v2, %v8_v1  ;;  %vm117_vm5 = vcmask 15360   ;;  %vm119_vm6 = vcmask 17408  }
   0x4   :  { %v90_v8 = vsel %vm89_vm3, %v88_v7, 0.0 }
   0x5   :  { %132 = vmatmul.mubr.msk.f32.vlgmr.msra.gmra.mrb[0].mxu0 %vm10_vm0, %v9_v2  ;;  %91 = vadd.xlane.f32.xlu1 %v90_v8 }
  0x92   :  { %v92_v15 = vpop.xlane.xlu1 %91 }
  0x93   :  { %v93_v18 = vmul.f32 20.0, %v92_v15 }
  0xd8   :  { %v83_v3 = vpop.f32.mrb[0].mxu0 }
  0xd9   :  { %v87_v4 = vmul.f32 20.0, %v83_v3  ;;  %v133_v5 = vpop.f32.mrb[1].mxu0 }
  0xdb   :  { %v95_v6 = vsel %vm94_vm2, %v87_v4, -inf }
  0xdc   :  { %96 = vmax.xlane.f32.xlu0 %v95_v6 }
 0x169   :  { %v97_v9 = vpop.xlane.xlu0 %96 }
 0x16a   :  { %v98_v10 = vsub.f32 %v87_v4, %v97_v9 }
 0x16c   :  { %v99_v11 = vmul.f32 1.442695, %v98_v10 }
 0x16e   :  { %136 = vpow2.f32 %v99_v11 }
 0x178   :  { %v137_v12 = vpop.eup %136 }
 0x179   :  { %v101_v13 = vsel %vm94_vm2, %v137_v12, 0.0 }
 0x17a   :  { %102 = vadd.xlane.f32.xlu0 %v101_v13 }
 0x207   :  { %v103_v14 = vpop.xlane.xlu0 %102 }
 0x208   :  { %138 = vlog2.f32 %v103_v14 }
 0x212   :  { %v139_v16 = vpop.eup %138 }
 0x213   :  { %v105_v17 = vmul.f32 0.6931472, %v139_v16 }
 0x215   :  { %v106_v19 = vadd.f32 %v105_v17, %v97_v9 }
 0x217   :  { %v107_v20 = vsub.f32 %v106_v19, %v93_v18 }
 0x219   :  { %v109_v21 = vsel %vm108_vm4, %v107_v20, 0.0 }
 0x21a   :  { %v110_v22 = vrot.slane %v109_v21, 4 }
 0x21c   :  { %v111_v23 = vadd.f32 %v110_v22, %v109_v21 }
 0x21e   :  { %v112_v24 = vrot.slane %v111_v23, 2 }
 0x220   :  { %v113_v25 = vadd.f32 %v112_v24, %v111_v23 }
 0x222   :  { %v114_v26 = vrot.slane %v113_v25, 1 }
 0x224   :  { %v115_v27 = vadd.f32 %v114_v26, %v113_v25 }
 0x226   :  { %v116_v28 = vmul.f32 0.5, %v115_v27 }
 0x228   :  { %v118_v29 = vsel %vm117_vm5, %v87_v4, %v116_v28 }
 0x229   :  { %120 = vst.msk [vmem:[%s162_s1] sm:$0x3] %vm119_vm6, %v118_v29 }

// kernel: codebert_contrastive_forward.2
= control target key start
LH: loop header
LB: loop body
LE: loop exit
PB: predicated region body
PF: predicated region fallthrough
CT: control target
= control target key end

     0   :  { %s2118_s27 = smov 0   ;;  %s2442_s0 = inlined_call_operand.vmem [shape: f32[2,16,32], index: 0, kind: input, shape index: {}]   ;;  %s2443_s1 = inlined_call_operand.vmem [shape: f32[2,32,32], index: 1, kind: input, shape index: {}]   ;;  %s2444_s2 = inlined_call_operand.vmem [shape: f32[2,2,16], index: 2, kind: input, shape index: {}]   ;;  %s2445_s3 = inlined_call_operand.vmem [shape: f32[18,96], index: 3, kind: input, shape index: {}]   ;;  %s2446_s4 = inlined_call_operand.vmem [shape: bf16[2,32,96], index: 4, kind: input, shape index: {}]   ;;  %s2447_s5 = inlined_call_operand.vmem [shape: bf16[2,32,32], index: 5, kind: input, shape index: {}]   ;;  %s2448_s6 = inlined_call_operand.vmem [shape: bf16[2,32,64], index: 6, kind: input, shape index: {}]   ;;  %s2449_s7 = inlined_call_operand.vmem [shape: bf16[2,64,32], index: 7, kind: input, shape index: {}]   ;;  %s2450_s8 = inlined_call_operand.vmem [shape: f32[2,2,32], index: 8, kind: output, shape index: {}]  }
   0x1 LB: > { %s1712_s28 = sadd.s32 4294967295, %s2064_s27   ;;  %p1716_p0 = scmp.ge.s32.totalorder %s2064_s27, 1  ;;  %s2064_s27 = sphi %s2118_s27, %s18_s27  }
   0x2   : > { %p281_p1 = scmp.lt.s32.totalorder %s2064_s27, 3 }
   0x4   : > { %p282_p2 = pnand %p1716_p0, %p281_p1 }
   0x5   : > { %p323_p3 = scmp.lt.s32.totalorder (!%p282_p2), %s1712_s28, 1  ;;  %vm352_vm0 = vcmask (!%p282_p2), 261120   ;;  %v1974_v14 = vld [vmem:[%s2446_s4] sm:$0xff] (!%p282_p2)   ;;  %v2066_v15 = vmov (!%p282_p2), 0.0   ;;  %v1975_v16 = vld [vmem:[%s2446_s4 + $0x8] sm:$0xff] (!%p282_p2)   ;;  %vm2067_vm1 = vmmov (!%p282_p2), 0   ;;  %v380_v21 = vlaneseq (!%p282_p2) }
   0x6   : > { %285 = sbr.rel (%p282_p2) target bundleno = 6022 (0x1786), region = 52  ;;  %1831 = vmatprep.subr.bf16.mxu1 (!%p282_p2), %v2066_v15  ;;  %1835 = vmatprep.mubr.msk.bf16.mxu1 (!%p282_p2), %vm2067_vm1, %v2066_v15  ;;  %v2154_v26 = vld [vmem:[%s2445_s3] sm:$0xff] (!%p282_p2)  ;;  %s2068_s17 = smov (!%p282_p2), 112   ;;  %vm495_vm2 = vcmask (!%p282_p2), 130048   ;;  %vm883_vm3 = vcmask (!%p282_p2), 523264   ;;  %vm1620_vm4 = vcmask (!%p282_p2), 254976  }
   0x7   : > { %1832 = vmatpush3.bf16.msra.mxu1 (!%p282_p2), %v1974_v14  ;;  %v2146_v24 = vshrl.u32 (!%p282_p2), %v380_v21, 7  ;;  %s2069_s18 = smov (!%p282_p2), 96   ;;  %s2070_s23 = smov (!%p282_p2), 64  }
   0x8   : > { %1833 = vmatprep.subr.bf16.mxu1 (!%p282_p2), %v2066_v15  ;;  %s2071_s30 = smov (!%p282_p2), 16  }
   0x9   : > { %v2149_v25 = vsub.s32 (!%p282_p2), 0, %v2146_v24  ;;  %v2159_v30 = vsub.s32 (!%p282_p2), 1, %v2146_v24  ;;  %v415_v39 = vsub.s32 (!%p282_p2), 2, %v2146_v24 }
   0xb   : > { %1834 = vmatpush3.bf16.msra.mxu1 (!%p282_p2), %v1975_v16  ;;  %v383_v29 = vrot.slane (!%p282_p2), %v2154_v26, %v2149_v25  ;;  %v389_v34 = vrot.slane (!%p282_p2), %v2154_v26, %v2159_v30  ;;  %v416_v40 = vrot.slane (!%p282_p2), %v2154_v26, %v415_v39 }
   0xd   : > { %s2452_s28 = smov (!%p323_p3, %s1712_s28), 1 }
   0xe   : > { %s1782_s29 = sshll.u32 %s2452_s28, 4  ;;  %s1783_s19 = sshll.u32 %s2452_s28, 5 }
   0xf   : > { %s327_s10 = scalar_lea.vmem %s2442_s0, %s1782_s29  ;;  %s332_s22 = scalar_lea.vmem %s2443_s1, %s1783_s19 }
  0x10   : > { %v342_v0 = vld [vmem:[%s327_s10] sm:$0xff]  ;;  %v343_v1 = vld [vmem:[%s327_s10 + $0x8] sm:$0xff]  ;;  %v2199_v63 = vld [vmem:[%s332_s22 + $0x10] sm:$0xff]  ;;  %s1721_s9 = sshll.u32 %s2452_s28, 1 }
  0x11   : > { %v353_v2 = vsel %vm352_vm0, %v342_v0, 0.0  ;;  %v356_v3 = vsel %vm352_vm0, %v343_v1, 0.0  ;;  %v2197_v61 = vld [vmem:[%s332_s22] sm:$0xff]  ;;  %s340_s11 = scalar_lea.vmem %s2450_s8, %s1721_s9 }
  0x12   : > { %354 = vadd.xlane.f32.xlu0 %v353_v2 }
  0x16   : > { %357 = vadd.xlane.f32.xlu0 %v356_v3 }
  0x9f   : > { %v355_v4 = vpop.xlane.xlu0 %354 }
  0xa0   : > { %v360_v5 = vmul.f32 0.03125, %v355_v4 }
  0xa2   : > { %v362_v6 = vsub.f32 %v342_v0, %v360_v5 }
  0xa3   : > { %v358_v7 = vpop.xlane.xlu0 %357 }
  0xa4   : > { %v361_v8 = vmul.f32 0.03125, %v358_v7  ;;  %v364_v9 = vmul.f32 %v362_v6, %v362_v6 }
  0xa6   : > { %v363_v10 = vsub.f32 %v343_v1, %v361_v8  ;;  %v366_v11 = vsel %vm352_vm0, %v364_v9, 0.0  ;;  %v2201_v1 = vld [vmem:[%s332_s22 + $0x8] sm:$0xff]  ;;  %v2207_v8 = vld [vmem:[%s332_s22 + $0x18] sm:$0xff] }
  0xa7   : > { %367 = vadd.xlane.f32.xlu1 %v366_v11 }
  0xa8   : > { %v365_v12 = vmul.f32 %v363_v10, %v363_v10 }
  0xaa   : > { %v369_v13 = vsel %vm352_vm0, %v365_v12, 0.0 }
  0xab   : > { %370 = vadd.xlane.f32.xlu1 %v369_v13 }
 0x134   : > { %v368_v17 = vpop.xlane.xlu1 %367 }
 0x135   : > { %v372_v18 = vmul.f32 0.03125, %v368_v17 }
 0x137   : > { %v374_v19 = vadd.f32 1e-12, %v372_v18 }
 0x138   : > { %v371_v20 = vpop.xlane.xlu1 %370 }
 0x139   : > { %1994 = vrsqrt.f32 %v374_v19  ;;  %v373_v22 = vmul.f32 0.03125, %v371_v20 }
 0x13b   : > { %v375_v23 = vadd.f32 1e-12, %v373_v22 }
 0x13d   : > { %1996 = vrsqrt.f32 %v375_v23 }
 0x143   : > { %v1995_v27 = vpop.eup %1994 }
 0x144   : > { %v378_v28 = vmul.f32 %v1995_v27, %v362_v6 }
 0x146   : > { %v384_v33 = vmul.f32 %v383_v29, %v378_v28 }
 0x147   : > { %v1997_v31 = vpop.eup %1996 }
 0x148   : > { %v379_v32 = vmul.f32 %v1997_v31, %v363_v10  ;;  %v2163_v36 = vadd.f32 %v389_v34, %v384_v33 }
 0x14a   : > { %v385_v35 = vmul.f32 %v383_v29, %v379_v32 }
 0x14c   : > { %v2165_v37 = vadd.f32 %v389_v34, %v385_v35 }
 0x14e   : > { %v412_v38 = vpack.c.bf16 %v2165_v37, %v2163_v36 }
 0x150   : > { %1836 = vmatmul.mubr.msk.bf16.vlgmr.msra.gmra.mrb[0].mxu1 %vm352_vm0, %v412_v38 }
 0x223   : > { %v466_v41 = vpop.f32.mrb[0].mxu1 }
 0x224   : > { %v467_v42 = vadd.f32 %v466_v41, %v416_v40  ;;  %v1837_v43 = vpop.f32.mrb[1].mxu1 }
 0x225   : > { %v469_v44 = vpop.f32.mrb[2].mxu1 }
 0x226   : > { %v470_v45 = vadd.f32 %v469_v44, %v416_v40  ;;  %475 = vrot.lane.b32.xlu0 %v467_v42, %s2068_s17  ;;  %v1838_v46 = vpop.f32.mrb[3].mxu1  ;;  %v481_v47 = vmul.f32 0.25, %v467_v42 }
 0x228   : > { %v482_v48 = vmul.f32 0.25, %v470_v45  ;;  %477 = vrot.lane.b32.xlu1 %v470_v45, %s2068_s17  ;;  %v2176_v49 = vpack.c.bf16 %v470_v45, %v467_v42 }
 0x22a   : > { %v485_v50 = vpack.c.bf16 %v482_v48, %v481_v47 }
 0x22c   : > { %491 = vrot.lane.b32.xlu1 %v2176_v49, %s2069_s18  ;;  %1843 = vmatprep.mubr.msk.bf16.mxu1 %vm495_vm2, %v485_v50 }
 0x298   : > { %v476_v51 = vpop.permute.xlu0 %475 }
 0x299   : > { %v483_v59 = vmul.f32 0.25, %v476_v51 }
 0x29a   : > { %v478_v52 = vpop.permute.xlu1 %477 }
 0x29b   : > { %v2181_v53 = vpack.c.bf16 %v478_v52, %v476_v51  ;;  %v484_v58 = vmul.f32 0.25, %v478_v52 }
 0x29d   : > { %493 = vrot.lane.b32.xlu1 %v2181_v53, %s2069_s18  ;;  %v486_v60 = vpack.c.bf16 %v484_v58, %v483_v59  ;;  %v1977_v58 = vld [vmem:[%s2447_s5 + $0x8] sm:$0xff]  }
 0x29e   : > { %v492_v54 = vpop.permute.xlu1 %491 }
 0x29f   : > { %v503_v55 = vsel %vm495_vm2, %v492_v54, 0  ;;  %1945 = vmatprep.subr.msk.bf16.mxu1 %vm495_vm2, %v492_v54 }
 0x2a0   : > { %1840 = vmatpush3.bf16.xpose.msra.mxu1 %v503_v55 }
 0x30f   : > { %v494_v56 = vpop.permute.xlu1 %493 }
 0x310   : > { %v506_v57 = vsel %vm495_vm2, %v494_v56, 0  ;;  %1946 = vmatprep.subr.msk.bf16.mxu1 %vm495_vm2, %v494_v56 }
 0x311   : > { %1842 = vmatpush3.bf16.xpose.msra.mxu1 %v506_v57  ;;  %v1976_v57 = vld [vmem:[%s2447_s5] sm:$0xff]  }
 0x312   : > { %1863 = vmatprep.subr.bf16.mxu1 %v2066_v15 }
 0x318   : > { %1844 = vmatmul.mubr.msk.bf16.vlgmr.msra.gmra.mrb[4].mxu1 %vm495_vm2, %v486_v60 }
 0x319   : > { %1867 = vmatprep.mubr.msk.bf16.mxu1 %vm2067_vm1, %v2066_v15 }
 0x3eb   : > { %v1845_v62 = vpop.f32.mrb[4].mxu1 }
 0x3ec   : > { %v542_v0 = vpop.f32.mrb[5].mxu1  ;;  %v551_v5 = vadd.f32 %v1845_v62, %v2199_v63 }
 0x3ed   : > { %v543_v2 = vadd.f32 %v542_v0, %v2197_v61  ;;  %v1846_v3 = vpop.f32.mrb[6].mxu1 }
 0x3ee   : > { %v545_v4 = vpop.f32.mrb[7].mxu1  ;;  %v554_v10 = vadd.f32 %v1846_v3, %v2207_v8  ;;  %v563_v11 = vsel %vm352_vm0, %v551_v5, -inf }
 0x3ef   : > { %v546_v6 = vadd.f32 %v545_v4, %v2201_v1  ;;  %v557_v7 = vsel %vm352_vm0, %v543_v2, -inf }
 0x3f0   : > { %558 = vmax.xlane.f32.xlu0 %v557_v7  ;;  %v566_v12 = vsel %vm352_vm0, %v554_v10, -inf }
 0x3f1   : > { %v560_v9 = vsel %vm352_vm0, %v546_v6, -inf }
 0x3f2   : > { %561 = vmax.xlane.f32.xlu1 %v560_v9 }
 0x3f4   : > { %564 = vmax.xlane.f32.xlu0 %v563_v11 }
 0x3f8   : > { %567 = vmax.xlane.f32.xlu0 %v566_v12 }
 0x47d   : > { %v559_v13 = vpop.xlane.xlu0 %558 }
 0x47e   : > { %v569_v14 = vsub.f32 %v543_v2, %v559_v13 }
 0x47f   : > { %v562_v16 = vpop.xlane.xlu1 %561 }
 0x480   : > { %v573_v19 = vmul.f32 1.442695, %v569_v14  ;;  %v570_v20 = vsub.f32 %v546_v6, %v562_v16 }
 0x481   : > { %v565_v17 = vpop.xlane.xlu0 %564 }
 0x482   : > { %v571_v18 = vsub.f32 %v551_v5, %v565_v17  ;;  %v575_v27 = vmul.f32 1.442695, %v570_v20 }
 0x484   : > { %v577_v21 = vmul.f32 1.442695, %v571_v18 }
 0x485   : > { %v568_v22 = vpop.xlane.xlu0 %567 }
 0x486   : > { %1998 = vpow2.f32 %v577_v21  ;;  %v572_v23 = vsub.f32 %v554_v10, %v568_v22  ;;  %v677_v10 = vsub.s32 3, %v2146_v24 }
 0x487   : > { %2000 = vpow2.f32 %v573_v19 }
 0x488   : > { %v579_v28 = vmul.f32 1.442695, %v572_v23  ;;  %v678_v11 = vrot.slane %v2154_v26, %v677_v10 }
 0x48a   : > { %2002 = vpow2.f32 %v579_v28 }
 0x48b   : > { %2004 = vpow2.f32 %v575_v27 }
 0x490   : > { %v1999_v29 = vpop.eup %1998 }
 0x491   : > { %v587_v31 = vsel %vm352_vm0, %v1999_v29, 0.0  ;;  %v2001_v32 = vpop.eup %2000 }
 0x492   : > { %588 = vadd.xlane.f32.xlu0 %v587_v31  ;;  %v581_v34 = vsel %vm352_vm0, %v2001_v32, 0.0 }
 0x494   : > { %v2003_v33 = vpop.eup %2002 }
 0x495   : > { %v590_v35 = vsel %vm352_vm0, %v2003_v33, 0.0  ;;  %v2005_v38 = vpop.eup %2004 }
 0x496   : > { %582 = vadd.xlane.f32.xlu0 %v581_v34  ;;  %591 = vadd.xlane.f32.xlu1 %v590_v35  ;;  %v584_v40 = vsel %vm352_vm0, %v2005_v38, 0.0 }
 0x49a   : > { %585 = vadd.xlane.f32.xlu1 %v584_v40 }
 0x4ab   : > { %605 = vrot.lane.b32.xlu1 %v2181_v53, %s2070_s23 }
 0x4ac   : > { %603 = vrot.lane.b32.xlu0 %v2176_v49, %s2070_s23 }
 0x51f   : > { %v589_v41 = vpop.xlane.xlu0 %588 }
 0x523   : > { %v592_v42 = vpop.xlane.xlu1 %591  ;;  %v583_v43 = vpop.xlane.xlu0 %582 }
 0x524   : > { %2006 = vrcp.f32 %v592_v42 }
 0x525   : > { %2008 = vrcp.f32 %v583_v43 }
 0x526   : > { %2010 = vrcp.f32 %v589_v41 }
 0x527   : > { %v586_v44 = vpop.xlane.xlu1 %585  ;;  %v604_v45 = vpop.permute.xlu0 %603 }
 0x528   : > { %2012 = vrcp.f32 %v586_v44  ;;  %1847 = vmatprep.subr.bf16.mxu0 %v604_v45 }
 0x529   : > { %1848 = vmatpush3.bf16.msra.mxu0 %v604_v45 }
 0x52b   : > { %v606_v46 = vpop.permute.xlu1 %605 }
 0x52c   : > { %1849 = vmatprep.subr.bf16.mxu0 %v606_v46 }
 0x52d   : > { %1850 = vmatpush3.bf16.msra.mxu0 %v606_v46  ;;  %v765_v46 = vsub.s32 4, %v2146_v24 }
 0x52e   : > { %1855 = vmatprep.subr.bf16.mxu0 %v2066_v15  ;;  %v2007_v47 = vpop.eup %2006 }
 0x52f   : > { %v2009_v48 = vpop.eup %2008  ;;  %v600_v51 = vmul.f32 %v2007_v47, %v2003_v33 }
 0x530   : > { %v2011_v50 = vpop.eup %2010  ;;  %v597_v52 = vmul.f32 %v2009_v48, %v2001_v32  ;;  %v766_v48 = vrot.slane %v2154_v26, %v765_v46 }
 0x531   : > { %v599_v54 = vmul.f32 %v2011_v50, %v1999_v29 }
 0x532   : > { %v2013_v49 = vpop.eup %2012 }
 0x533   : > { %v598_v53 = vmul.f32 %v2013_v49, %v2005_v38  ;;  %v602_v56 = vpack.c.bf16 %v600_v51, %v599_v54  ;;  %v1979_v38 = vld [vmem:[%s2448_s6 + $0x8] sm:$0xff]   ;;  %v771_v49 = vsub.s32 5, %v2146_v24 }
 0x535   : > { %v601_v55 = vpack.c.bf16 %v598_v53, %v597_v52  ;;  %v772_v54 = vrot.slane %v2154_v26, %v771_v49 }
 0x537   : > { %1851 = vmatprep.mubr.msk.bf16.mxu0 %vm352_vm0, %v601_v55 }
 0x538   : > { %1852 = vmatmul.mubr.msk.bf16.vlgmr.msra.gmra.mrb[0].mxu0 %vm352_vm0, %v602_v56 }
 0x539   : > { %1859 = vmatprep.mubr.msk.bf16.mxu0 %vm2067_vm1, %v2066_v15  ;;  %1856 = vmatpush3.bf16.msra.mxu0 %v1976_v57 }
 0x53a   : > { %1857 = vmatprep.subr.bf16.mxu0 %v2066_v15 }
 0x53d   : > { %1858 = vmatpush3.bf16.msra.mxu0 %v1977_v58 }
 0x53e   : > { %1871 = vmatprep.subr.bf16.mxu0 %v2066_v15 }
 0x60b   : > { %v1853_v59 = vpop.f32.mrb[0].mxu0 }
 0x60c   : > { %v649_v60 = vpop.f32.mrb[1].mxu0 }
 0x60d   : > { %v1854_v62 = vpop.f32.mrb[2].mxu0 }
 0x60e   : > { %v1964_v0 = vpack.i.bf16 %v1854_v62, %v1853_v59  ;;  %v652_v2 = vpop.f32.mrb[3].mxu0  ;;  %v1980_v59 = vld [vmem:[%s2449_s7] sm:$0xff]   ;;  %v1982_v62 = vld [vmem:[%s2449_s7 + $0x10] sm:$0xff]  }
 0x610   : > { %1965 = vrot.lane.b32.xlu1 %v1964_v0, %s2071_s30  ;;  %v1983_v0 = vld [vmem:[%s2449_s7 + $0x18] sm:$0xff]  }
 0x682   : > { %v1966_v3 = vpop.permute.xlu1 %1965 }
 0x683   : > { %v1968_v4 = vunpack.i.h.bf16 %v1966_v3  ;;  %v1967_v5 = vunpack.i.l.bf16 %v1966_v3 }
 0x685   : > { %v672_v6 = vsel %vm495_vm2, %v649_v60, %v1967_v5  ;;  %v673_v7 = vsel %vm495_vm2, %v652_v2, %v1968_v4  ;;  %v1981_v60 = vld [vmem:[%s2449_s7 + $0x8] sm:$0xff]   ;;  %v778_v2 = vsub.s32 6, %v2146_v24 }
 0x686   : > { %v674_v9 = vpack.c.bf16 %v673_v7, %v672_v6 }
 0x687   : > { %v779_v3 = vrot.slane %v2154_v26, %v778_v2 }
 0x688   : > { %1860 = vmatmul.mubr.msk.bf16.vlgmr.msra.gmra.mrb[4].mxu0 %vm352_vm0, %v674_v9 }
 0x689   : > { %1879 = vmatprep.mubr.msk.bf16.mxu0 %vm2067_vm1, %v2066_v15  ;;  %1872 = vmatpush3.bf16.msra.mxu0 %v1980_v59 }
 0x68a   : > { %1873 = vmatprep.subr.bf16.mxu0 %v2066_v15 }
 0x68d   : > { %1874 = vmatpush3.bf16.msra.mxu0 %v1981_v60 }
 0x68e   : > { %1875 = vmatprep.subr.bf16.mxu0 %v2066_v15 }
 0x691   : > { %1876 = vmatpush3.bf16.msra.mxu0 %v1982_v62  ;;  %v1985_v62 = vld [vmem:[%s2446_s4 + $0x18] sm:$0xff]  }
 0x692   : > { %1877 = vmatprep.subr.bf16.mxu0 %v2066_v15 }
 0x695   : > { %1878 = vmatpush3.bf16.msra.mxu0 %v1983_v0 }
 0x75b   : > { %v728_v12 = vpop.f32.mrb[4].mxu0 }
 0x75c   : > { %v729_v13 = vadd.f32 %v728_v12, %v678_v11  ;;  %v1861_v14 = vpop.f32.mrb[5].mxu0 }
 0x75d   : > { %v731_v16 = vpop.f32.mrb[6].mxu0 }
 0x75e   : > { %v732_v17 = vadd.f32 %v731_v16, %v678_v11  ;;  %v1862_v18 = vpop.f32.mrb[7].mxu0  ;;  %v735_v19 = vadd.f32 %v729_v13, %v2163_v36 }
 0x760   : > { %v737_v20 = vsel %vm352_vm0, %v735_v19, 0.0  ;;  %v736_v21 = vadd.f32 %v732_v17, %v2165_v37  ;;  %v1978_v37 = vld [vmem:[%s2448_s6] sm:$0xff]  }
 0x761   : > { %738 = vadd.xlane.f32.xlu1 %v737_v20  ;;  %1864 = vmatpush3.bf16.msra.mxu1 %v1978_v37 }
 0x762   : > { %v740_v22 = vsel %vm352_vm0, %v736_v21, 0.0  ;;  %1865 = vmatprep.subr.bf16.mxu1 %v2066_v15 }
 0x763   : > { %741 = vadd.xlane.f32.xlu0 %v740_v22 }
 0x765   : > { %1866 = vmatpush3.bf16.msra.mxu1 %v1979_v38 }
 0x766   : > { %1883 = vmatprep.subr.bf16.mxu1 %v2066_v15 }
 0x7ee   : > { %v739_v23 = vpop.xlane.xlu1 %738 }
 0x7ef   : > { %v743_v27 = vmul.f32 0.03125, %v739_v23 }
 0x7f0   : > { %v742_v28 = vpop.xlane.xlu0 %741 }
 0x7f1   : > { %v745_v29 = vsub.f32 %v735_v19, %v743_v27  ;;  %v744_v31 = vmul.f32 0.03125, %v742_v28 }
 0x7f3   : > { %v746_v32 = vsub.f32 %v736_v21, %v744_v31  ;;  %v747_v33 = vmul.f32 %v745_v29, %v745_v29 }
 0x7f5   : > { %v749_v34 = vsel %vm352_vm0, %v747_v33, 0.0  ;;  %v748_v35 = vmul.f32 %v746_v32, %v746_v32 }
 0x7f6   : > { %750 = vadd.xlane.f32.xlu0 %v749_v34 }
 0x7f7   : > { %v752_v36 = vsel %vm352_vm0, %v748_v35, 0.0 }
 0x7fa   : > { %753 = vadd.xlane.f32.xlu0 %v752_v36  ;;  %v857_v36 = vsub.s32 7, %v2146_v24 }
 0x7fc   : > { %v858_v37 = vrot.slane %v2154_v26, %v857_v36 }
 0x883   : > { %v751_v40 = vpop.xlane.xlu0 %750 }
 0x884   : > { %v755_v41 = vmul.f32 0.03125, %v751_v40 }
 0x886   : > { %v757_v42 = vadd.f32 1e-12, %v755_v41 }
 0x887   : > { %v754_v43 = vpop.xlane.xlu0 %753 }
 0x888   : > { %2014 = vrsqrt.f32 %v757_v42  ;;  %v756_v44 = vmul.f32 0.03125, %v754_v43 }
 0x88a   : > { %v758_v45 = vadd.f32 1e-12, %v756_v44 }
 0x88c   : > { %2016 = vrsqrt.f32 %v758_v45 }
 0x892   : > { %v2015_v47 = vpop.eup %2014 }
 0x893   : > { %v761_v50 = vmul.f32 %v2015_v47, %v745_v29 }
 0x895   : > { %v767_v52 = vmul.f32 %v766_v48, %v761_v50 }
 0x896   : > { %v2017_v51 = vpop.eup %2016 }
 0x897   : > { %v762_v53 = vmul.f32 %v2017_v51, %v746_v32  ;;  %v773_v56 = vadd.f32 %v772_v54, %v767_v52 }
 0x899   : > { %v768_v55 = vmul.f32 %v766_v48, %v762_v53 }
 0x89b   : > { %v774_v57 = vadd.f32 %v772_v54, %v768_v55 }
 0x89d   : > { %v775_v58 = vpack.c.bf16 %v774_v57, %v773_v56 }
 0x89f   : > { %1868 = vmatmul.mubr.msk.bf16.vlgmr.msra.gmra.mrb[8].mxu1 %vm352_vm0, %v775_v58 }
 0x8a0   : > { %1887 = vmatprep.mubr.msk.bf16.mxu1 %vm2067_vm1, %v2066_v15 }
 0x972   : > { %v829_v4 = vpop.f32.mrb[8].mxu1 }
 0x973   : > { %v830_v5 = vadd.f32 %v829_v4, %v779_v3  ;;  %v1869_v6 = vpop.f32.mrb[9].mxu1 }
 0x974   : > { %v832_v7 = vpop.f32.mrb[10].mxu1 }
 0x975   : > { %v836_v9 = vmul.f32 %v830_v5, %v830_v5  ;;  %v833_v11 = vadd.f32 %v832_v7, %v779_v3  ;;  %v1870_v12 = vpop.f32.mrb[11].mxu1 }
 0x977   : > { %v838_v13 = vmul.f32 %v836_v9, %v830_v5  ;;  %v837_v14 = vmul.f32 %v833_v11, %v833_v11  ;;  %v2307_v9 = vld [vmem:[%s2445_s3 + $0x8] sm:$0xff] }
 0x979   : > { %v840_v16 = vmul.f32 0.044715, %v838_v13  ;;  %v839_v17 = vmul.f32 %v837_v14, %v833_v11 }
 0x97b   : > { %v842_v18 = vadd.f32 %v840_v16, %v830_v5  ;;  %v841_v19 = vmul.f32 0.044715, %v839_v17 }
 0x97d   : > { %v844_v20 = vmul.f32 0.7978846, %v842_v18  ;;  %v843_v21 = vadd.f32 %v841_v19, %v833_v11  ;;  %v965_v18 = vrot.slane %v2307_v9, %v2159_v30 }
 0x97f   : > { %2018 = vtanh.f32 %v844_v20  ;;  %v845_v22 = vmul.f32 0.7978846, %v843_v21 }
 0x981   : > { %2020 = vtanh.f32 %v845_v22 }
 0x989   : > { %v2019_v23 = vpop.eup %2018 }
 0x98a   : > { %v848_v27 = vadd.f32 1.0, %v2019_v23  ;;  %v996_v23 = vrot.slane %v2307_v9, %v415_v39 }
 0x98b   : > { %v2021_v28 = vpop.eup %2020 }
 0x98c   : > { %v850_v29 = vmul.f32 0.5, %v848_v27  ;;  %v849_v31 = vadd.f32 1.0, %v2021_v28 }
 0x98e   : > { %v851_v32 = vmul.f32 0.5, %v849_v31  ;;  %v852_v33 = vmul.f32 %v850_v29, %v830_v5 }
 0x990   : > { %v853_v34 = vmul.f32 %v851_v32, %v833_v11  ;;  %v959_v11 = vrot.slane %v2307_v9, %v2149_v25 }
 0x992   : > { %v854_v35 = vpack.c.bf16 %v853_v34, %v852_v33 }
 0x994   : > { %1880 = vmatmul.mubr.msk.bf16.vlgmr.msra.gmra.mrb[8].mxu0 %vm883_vm3, %v854_v35 }
 0xa67   : > { %v921_v38 = vpop.f32.mrb[8].mxu0 }
 0xa68   : > { %v922_v40 = vadd.f32 %v921_v38, %v858_v37  ;;  %v1881_v41 = vpop.f32.mrb[9].mxu0 }
 0xa69   : > { %v924_v42 = vpop.f32.mrb[10].mxu0 }
 0xa6a   : > { %v925_v43 = vadd.f32 %v924_v42, %v858_v37  ;;  %v1882_v44 = vpop.f32.mrb[11].mxu0  ;;  %v928_v45 = vadd.f32 %v922_v40, %v773_v56 }
 0xa6c   : > { %v930_v47 = vsel %vm352_vm0, %v928_v45, 0.0  ;;  %v929_v48 = vadd.f32 %v925_v43, %v774_v57  ;;  %v1984_v57 = vld [vmem:[%s2446_s4 + $0x10] sm:$0xff]  }
 0xa6d   : > { %931 = vadd.xlane.f32.xlu1 %v930_v47  ;;  %1884 = vmatpush3.bf16.msra.mxu1 %v1984_v57 }
 0xa6e   : > { %v933_v50 = vsel %vm352_vm0, %v929_v48, 0.0  ;;  %1885 = vmatprep.subr.bf16.mxu1 %v2066_v15 }
 0xa6f   : > { %934 = vadd.xlane.f32.xlu0 %v933_v50 }
 0xa71   : > { %1886 = vmatpush3.bf16.msra.mxu1 %v1985_v62 }
 0xafa   : > { %v932_v51 = vpop.xlane.xlu1 %931 }
 0xafb   : > { %v936_v52 = vmul.f32 0.03125, %v932_v51 }
 0xafc   : > { %v935_v53 = vpop.xlane.xlu0 %934 }
 0xafd   : > { %v938_v54 = vsub.f32 %v928_v45, %v936_v52  ;;  %v937_v55 = vmul.f32 0.03125, %v935_v53 }
 0xaff   : > { %v939_v26 = vsub.f32 %v929_v48, %v937_v55  ;;  %v940_v58 = vmul.f32 %v938_v54, %v938_v54 }
 0xb01   : > { %v942_v59 = vsel %vm352_vm0, %v940_v58, 0.0  ;;  %v941_v60 = vmul.f32 %v939_v26, %v939_v26 }
 0xb02   : > { %943 = vadd.xlane.f32.xlu1 %v942_v59 }
 0xb03   : > { %v945_v56 = vsel %vm352_vm0, %v941_v60, 0.0 }
 0xb04   : > { %946 = vadd.xlane.f32.xlu0 %v945_v56 }
 0xb8f   : > { %v944_v0 = vpop.xlane.xlu1 %943 }
 0xb90   : > { %v948_v3 = vmul.f32 0.03125, %v944_v0 }
 0xb91   : > { %v947_v4 = vpop.xlane.xlu0 %946 }
 0xb92   : > { %v950_v5 = vadd.f32 1e-12, %v948_v3  ;;  %v949_v6 = vmul.f32 0.03125, %v947_v4 }
 0xb94   : > { %2022 = vrsqrt.f32 %v950_v5  ;;  %v951_v7 = vadd.f32 1e-12, %v949_v6 }
 0xb96   : > { %2024 = vrsqrt.f32 %v951_v7 }
 0xb9e   : > { %v2023_v12 = vpop.eup %2022 }
 0xb9f   : > { %v954_v13 = vmul.f32 %v2023_v12, %v938_v54 }
 0xba0   : > { %v2025_v14 = vpop.eup %2024 }
 0xba1   : > { %v960_v16 = vmul.f32 %v959_v11, %v954_v13  ;;  %v955_v17 = vmul.f32 %v2025_v14, %v939_v26 }
 0xba3   : > { %v961_v19 = vmul.f32 %v959_v11, %v955_v17  ;;  %v2313_v20 = vadd.f32 %v965_v18, %v960_v16 }
 0xba5   : > { %v2315_v21 = vadd.f32 %v965_v18, %v961_v19 }
 0xba7   : > { %v992_v22 = vpack.c.bf16 %v2315_v21, %v2313_v20 }
 0xba9   : > { %1888 = vmatmul.mubr.msk.bf16.vlgmr.msra.gmra.mrb[12].mxu1 %vm352_vm0, %v992_v22 }
 0xc7c   : > { %v1046_v27 = vpop.f32.mrb[12].mxu1 }
 0xc7d   : > { %v1047_v28 = vadd.f32 %v1046_v27, %v996_v23  ;;  %v1889_v29 = vpop.f32.mrb[13].mxu1 }
 0xc7e   : > { %v1049_v31 = vpop.f32.mrb[14].mxu1 }
 0xc7f   : > { %v1050_v32 = vadd.f32 %v1049_v31, %v996_v23  ;;  %1055 = vrot.lane.b32.xlu1 %v1047_v28, %s2068_s17  ;;  %v1890_v33 = vpop.f32.mrb[15].mxu1  ;;  %v1061_v34 = vmul.f32 0.25, %v1047_v28 }
 0xc81   : > { %v1062_v35 = vmul.f32 0.25, %v1050_v32  ;;  %1057 = vrot.lane.b32.xlu0 %v1050_v32, %s2068_s17  ;;  %v2325_v37 = vpack.c.bf16 %v1050_v32, %v1047_v28 }
 0xc83   : > { %v1065_v38 = vpack.c.bf16 %v1062_v35, %v1061_v34  ;;  %1071 = vrot.lane.b32.xlu1 %v2325_v37, %s2069_s18 }
 0xc85   : > { %1895 = vmatprep.mubr.msk.bf16.mxu1 %vm495_vm2, %v1065_v38 }
 0xcf1   : > { %v1056_v39 = vpop.permute.xlu1 %1055 }
 0xcf2   : > { %v1063_v48 = vmul.f32 0.25, %v1056_v39 }
 0xcf3   : > { %v1058_v40 = vpop.permute.xlu0 %1057 }
 0xcf4   : > { %v1068_v41 = vpack.c.bf16 %v1058_v40, %v1056_v39  ;;  %v1064_v47 = vmul.f32 0.25, %v1058_v40 }
 0xcf5   : > { %v1072_v42 = vpop.permute.xlu1 %1071 }
 0xcf6   : > { %v1082_v43 = vsel %vm495_vm2, %v1072_v42, 0  ;;  %1073 = vrot.lane.b32.xlu1 %v1068_v41, %s2069_s18  ;;  %1947 = vmatprep.subr.msk.bf16.mxu1 %vm495_vm2, %v1072_v42  ;;  %v1066_v50 = vpack.c.bf16 %v1064_v47, %v1063_v48  ;;  %v1987_v47 = vld [vmem:[%s2447_s5 + $0x18] sm:$0xff]   ;;  %s336_s18 = scalar_lea.vmem %s2444_s2, %s1721_s9 }
 0xcf7   : > { %1892 = vmatpush3.bf16.xpose.msra.mxu1 %v1082_v43 }
 0xd68   : > { %v1074_v44 = vpop.permute.xlu1 %1073 }
 0xd69   : > { %v1085_v45 = vsel %vm495_vm2, %v1074_v44, 0  ;;  %1948 = vmatprep.subr.msk.bf16.mxu1 %vm495_vm2, %v1074_v44 }
 0xd6a   : > { %1894 = vmatpush3.bf16.xpose.msra.mxu1 %v1085_v45  ;;  %v1986_v45 = vld [vmem:[%s2447_s5 + $0x10] sm:$0xff]  }
 0xd6b   : > { %1915 = vmatprep.subr.bf16.mxu1 %v2066_v15 }
 0xd71   : > { %1896 = vmatmul.mubr.msk.bf16.vlgmr.msra.gmra.mrb[16].mxu1 %vm495_vm2, %v1066_v50 }
 0xd72   : > { %1919 = vmatprep.mubr.msk.bf16.mxu1 %vm2067_vm1, %v2066_v15 }
 0xe44   : > { %v1897_v51 = vpop.f32.mrb[16].mxu1 }
 0xe45   : > { %v1130_v52 = vadd.f32 %v1897_v51, %v2199_v63  ;;  %v1121_v53 = vpop.f32.mrb[17].mxu1 }
 0xe46   : > { %v1122_v54 = vadd.f32 %v1121_v53, %v2197_v61  ;;  %v1898_v55 = vpop.f32.mrb[18].mxu1 }
 0xe47   : > { %v1124_v26 = vpop.f32.mrb[19].mxu1  ;;  %v1142_v58 = vsel %vm352_vm0, %v1130_v52, -inf  ;;  %v1133_v57 = vadd.f32 %v1898_v55, %v2207_v8 }
 0xe48   : > { %v1125_v59 = vadd.f32 %v1124_v26, %v2201_v1  ;;  %1143 = vmax.xlane.f32.xlu0 %v1142_v58  ;;  %v1136_v60 = vsel %vm352_vm0, %v1122_v54, -inf }
 0xe49   : > { %1137 = vmax.xlane.f32.xlu1 %v1136_v60  ;;  %v1145_v63 = vsel %vm352_vm0, %v1133_v57, -inf }
 0xe4a   : > { %v1139_v56 = vsel %vm352_vm0, %v1125_v59, -inf }
 0xe4c   : > { %1140 = vmax.xlane.f32.xlu0 %v1139_v56  ;;  %v1257_v56 = vrot.slane %v2307_v9, %v677_v10 }
 0xe50   : > { %1146 = vmax.xlane.f32.xlu0 %v1145_v63 }
 0xed5   : > { %v1144_v62 = vpop.xlane.xlu0 %1143 }
 0xed6   : > { %v1150_v61 = vsub.f32 %v1130_v52, %v1144_v62  ;;  %v1138_v0 = vpop.xlane.xlu1 %1137 }
 0xed7   : > { %v1148_v3 = vsub.f32 %v1122_v54, %v1138_v0 }
 0xed8   : > { %v1156_v4 = vmul.f32 1.442695, %v1150_v61 }
 0xed9   : > { %v1152_v5 = vmul.f32 1.442695, %v1148_v3  ;;  %v1141_v6 = vpop.xlane.xlu0 %1140 }
 0xeda   : > { %2026 = vpow2.f32 %v1156_v4  ;;  %v1149_v1 = vsub.f32 %v1125_v59, %v1141_v6 }
 0xedb   : > { %2028 = vpow2.f32 %v1152_v5 }
 0xedc   : > { %v1154_v12 = vmul.f32 1.442695, %v1149_v1 }
 0xedd   : > { %v1147_v7 = vpop.xlane.xlu0 %1146 }
 0xede   : > { %v1151_v11 = vsub.f32 %v1133_v57, %v1147_v7 }
 0xee0   : > { %v1158_v13 = vmul.f32 1.442695, %v1151_v11 }
 0xee2   : > { %2030 = vpow2.f32 %v1158_v13 }
 0xee3   : > { %2032 = vpow2.f32 %v1154_v12 }
 0xee4   : > { %v2027_v8 = vpop.eup %2026 }
 0xee5   : > { %v1166_v14 = vsel %vm352_vm0, %v2027_v8, 0.0  ;;  %v2029_v16 = vpop.eup %2028 }
 0xee6   : > { %1167 = vadd.xlane.f32.xlu1 %v1166_v14  ;;  %v1160_v17 = vsel %vm352_vm0, %v2029_v16, 0.0 }
 0xeea   : > { %1161 = vadd.xlane.f32.xlu1 %v1160_v17 }
 0xeec   : > { %v2031_v18 = vpop.eup %2030 }
 0xeed   : > { %v1169_v19 = vsel %vm352_vm0, %v2031_v18, 0.0  ;;  %v2033_v22 = vpop.eup %2032 }
 0xeee   : > { %1170 = vadd.xlane.f32.xlu0 %v1169_v19  ;;  %v1163_v23 = vsel %vm352_vm0, %v2033_v22, 0.0 }
 0xef2   : > { %1164 = vadd.xlane.f32.xlu0 %v1163_v23 }
 0xefb   : > { %1182 = vrot.lane.b32.xlu1 %v2325_v37, %s2070_s23 }
 0xf08   : > { %1184 = vrot.lane.b32.xlu0 %v1068_v41, %s2070_s23 }
 0xf73   : > { %v1168_v27 = vpop.xlane.xlu1 %1167 }
 0xf77   : > { %v1162_v28 = vpop.xlane.xlu1 %1161 }
 0xf7b   : > { %v1171_v29 = vpop.xlane.xlu0 %1170  ;;  %v1183_v31 = vpop.permute.xlu1 %1182 }
 0xf7c   : > { %1899 = vmatprep.subr.bf16.mxu0 %v1183_v31  ;;  %2034 = vrcp.f32 %v1171_v29 }
 0xf7d   : > { %1900 = vmatpush3.bf16.msra.mxu0 %v1183_v31  ;;  %2036 = vrcp.f32 %v1162_v28  ;;  %v1345_v31 = vrot.slane %v2307_v9, %v765_v46  ;;  %v1990_v46 = vld [vmem:[%s2449_s7 + $0x20] sm:$0xff]  }
 0xf7e   : > { %2038 = vrcp.f32 %v1168_v27 }
 0xf7f   : > { %v1165_v32 = vpop.xlane.xlu0 %1164 }
 0xf80   : > { %2040 = vrcp.f32 %v1165_v32 }
 0xf83   : > { %v1185_v33 = vpop.permute.xlu0 %1184 }
 0xf84   : > { %1901 = vmatprep.subr.bf16.mxu0 %v1185_v33 }
 0xf85   : > { %1902 = vmatpush3.bf16.msra.mxu0 %v1185_v33 }
 0xf86   : > { %1907 = vmatprep.subr.bf16.mxu0 %v2066_v15  ;;  %v2035_v34 = vpop.eup %2034 }
 0xf87   : > { %v2037_v35 = vpop.eup %2036  ;;  %v1179_v39 = vmul.f32 %v2035_v34, %v2031_v18  ;;  %v1989_v18 = vld [vmem:[%s2448_s6 + $0x18] sm:$0xff]  }
 0xf88   : > { %v2039_v37 = vpop.eup %2038  ;;  %v1176_v40 = vmul.f32 %v2037_v35, %v2029_v16 }
 0xf89   : > { %v1178_v42 = vmul.f32 %v2039_v37, %v2027_v8 }
 0xf8a   : > { %v2041_v38 = vpop.eup %2040 }
 0xf8b   : > { %v1177_v41 = vmul.f32 %v2041_v38, %v2033_v22  ;;  %v1181_v44 = vpack.c.bf16 %v1179_v39, %v1178_v42  ;;  %v1351_v38 = vrot.slane %v2307_v9, %v771_v49  ;;  %v1991_v49 = vld [vmem:[%s2449_s7 + $0x28] sm:$0xff]  }
 0xf8d   : > { %v1180_v43 = vpack.c.bf16 %v1177_v41, %v1176_v40 }
 0xf8f   : > { %1903 = vmatprep.mubr.msk.bf16.mxu0 %vm352_vm0, %v1180_v43  ;;  %v1992_v43 = vld [vmem:[%s2449_s7 + $0x30] sm:$0xff]  }
 0xf90   : > { %1904 = vmatmul.mubr.msk.bf16.vlgmr.msra.gmra.mrb[12].mxu0 %vm352_vm0, %v1181_v44  ;;  %v1993_v44 = vld [vmem:[%s2449_s7 + $0x38] sm:$0xff]  }
 0xf91   : > { %1911 = vmatprep.mubr.msk.bf16.mxu0 %vm2067_vm1, %v2066_v15  ;;  %1908 = vmatpush3.bf16.msra.mxu0 %v1986_v45  ;;  %v1358_v45 = vrot.slane %v2307_v9, %v778_v2 }
 0xf92   : > { %1909 = vmatprep.subr.bf16.mxu0 %v2066_v15 }
 0xf95   : > { %1910 = vmatpush3.bf16.msra.mxu0 %v1987_v47 }
 0xf96   : > { %1923 = vmatprep.subr.bf16.mxu0 %v2066_v15 }
0x1063   : > { %v1905_v48 = vpop.f32.mrb[12].mxu0 }
0x1064   : > { %v1228_v50 = vpop.f32.mrb[13].mxu0 }
0x1065   : > { %v1906_v51 = vpop.f32.mrb[14].mxu0 }
0x1066   : > { %v1969_v52 = vpack.i.bf16 %v1906_v51, %v1905_v48  ;;  %v1231_v53 = vpop.f32.mrb[15].mxu0 }
0x1068   : > { %1970 = vrot.lane.b32.xlu1 %v1969_v52, %s2071_s30 }
0x10da   : > { %v1971_v54 = vpop.permute.xlu1 %1970 }
0x10db   : > { %v1973_v55 = vunpack.i.h.bf16 %v1971_v54  ;;  %v1972_v26 = vunpack.i.l.bf16 %v1971_v54 }
0x10dd   : > { %v1251_v58 = vsel %vm495_vm2, %v1228_v50, %v1972_v26  ;;  %v1252_v59 = vsel %vm495_vm2, %v1231_v53, %v1973_v55 }
0x10de   : > { %v1253_v60 = vpack.c.bf16 %v1252_v59, %v1251_v58 }
0x10e0   : > { %1912 = vmatmul.mubr.msk.bf16.vlgmr.msra.gmra.mrb[16].mxu0 %vm352_vm0, %v1253_v60 }
0x10e1   : > { %1931 = vmatprep.mubr.msk.bf16.mxu0 %vm2067_vm1, %v2066_v15  ;;  %1924 = vmatpush3.bf16.msra.mxu0 %v1990_v46 }
0x10e2   : > { %1925 = vmatprep.subr.bf16.mxu0 %v2066_v15 }
0x10e5   : > { %1926 = vmatpush3.bf16.msra.mxu0 %v1991_v49 }
0x10e6   : > { %1927 = vmatprep.subr.bf16.mxu0 %v2066_v15 }
0x10e9   : > { %1928 = vmatpush3.bf16.msra.mxu0 %v1992_v43 }
0x10ea   : > { %1929 = vmatprep.subr.bf16.mxu0 %v2066_v15 }
0x10ed   : > { %1930 = vmatpush3.bf16.msra.mxu0 %v1993_v44 }
0x11b3   : > { %v1307_v57 = vpop.f32.mrb[16].mxu0 }
0x11b4   : > { %v1308_v63 = vadd.f32 %v1307_v57, %v1257_v56  ;;  %v1913_v62 = vpop.f32.mrb[17].mxu0 }
0x11b5   : > { %v1310_v61 = vpop.f32.mrb[18].mxu0 }
0x11b6   : > { %v1311_v0 = vadd.f32 %v1310_v61, %v1257_v56  ;;  %v1914_v3 = vpop.f32.mrb[19].mxu0  ;;  %v1314_v4 = vadd.f32 %v1308_v63, %v2313_v20 }
0x11b8   : > { %v1316_v5 = vsel %vm352_vm0, %v1314_v4, 0.0  ;;  %v1315_v6 = vadd.f32 %v1311_v0, %v2315_v21  ;;  %v1988_v21 = vld [vmem:[%s2448_s6 + $0x10] sm:$0xff]  }
0x11b9   : > { %1317 = vadd.xlane.f32.xlu1 %v1316_v5  ;;  %1916 = vmatpush3.bf16.msra.mxu1 %v1988_v21 }
0x11ba   : > { %v1319_v1 = vsel %vm352_vm0, %v1315_v6, 0.0  ;;  %1917 = vmatprep.subr.bf16.mxu1 %v2066_v15 }
0x11bb   : > { %1320 = vadd.xlane.f32.xlu0 %v1319_v1 }
0x11bd   : > { %1918 = vmatpush3.bf16.msra.mxu1 %v1989_v18 }
0x1246   : > { %v1318_v7 = vpop.xlane.xlu1 %1317 }
0x1247   : > { %v1322_v11 = vmul.f32 0.03125, %v1318_v7  ;;  %v1437_v7 = vrot.slane %v2307_v9, %v857_v36 }
0x1248   : > { %v1321_v12 = vpop.xlane.xlu0 %1320 }
0x1249   : > { %v1324_v10 = vsub.f32 %v1314_v4, %v1322_v11  ;;  %v1323_v13 = vmul.f32 0.03125, %v1321_v12 }
0x124b   : > { %v1325_v8 = vsub.f32 %v1315_v6, %v1323_v13  ;;  %v1326_v14 = vmul.f32 %v1324_v10, %v1324_v10 }
0x124d   : > { %v1328_v16 = vsel %vm352_vm0, %v1326_v14, 0.0  ;;  %v1327_v17 = vmul.f32 %v1325_v8, %v1325_v8 }
0x124e   : > { %1329 = vadd.xlane.f32.xlu0 %v1328_v16 }
0x124f   : > { %v1331_v20 = vsel %vm352_vm0, %v1327_v17, 0.0 }
0x1250   : > { %1332 = vadd.xlane.f32.xlu1 %v1331_v20 }
0x12db   : > { %v1330_v19 = vpop.xlane.xlu0 %1329 }
0x12dc   : > { %v1334_v22 = vmul.f32 0.03125, %v1330_v19 }
0x12dd   : > { %v1333_v23 = vpop.xlane.xlu1 %1332 }
0x12de   : > { %v1336_v27 = vadd.f32 1e-12, %v1334_v22  ;;  %v1335_v28 = vmul.f32 0.03125, %v1333_v23 }
0x12e0   : > { %2042 = vrsqrt.f32 %v1336_v27  ;;  %v1337_v29 = vadd.f32 1e-12, %v1335_v28 }
0x12e2   : > { %2044 = vrsqrt.f32 %v1337_v29 }
0x12ea   : > { %v2043_v32 = vpop.eup %2042 }
0x12eb   : > { %v1340_v33 = vmul.f32 %v2043_v32, %v1324_v10 }
0x12ec   : > { %v2045_v34 = vpop.eup %2044 }
0x12ed   : > { %v1346_v35 = vmul.f32 %v1345_v31, %v1340_v33  ;;  %v1341_v37 = vmul.f32 %v2045_v34, %v1325_v8 }
0x12ef   : > { %v1347_v39 = vmul.f32 %v1345_v31, %v1341_v37  ;;  %v1352_v40 = vadd.f32 %v1351_v38, %v1346_v35  ;;  %v2072_v31 = vmov 0.0|0.0  }
0x12f0   : > { %1942 = vmatprep.subr.bf16.mxu1 %v2072_v31 }
0x12f1   : > { %v1353_v41 = vadd.f32 %v1351_v38, %v1347_v39  ;;  %v351_v39 = vld [vmem:[%s2445_s3 + $0x10] sm:$0x3] }
0x12f2   : > { %v1543_v44 = vrot.slane %v351_v39, %v2159_v30 }
0x12f3   : > { %v1354_v42 = vpack.c.bf16 %v1353_v41, %v1352_v40 }
0x12f5   : > { %1920 = vmatmul.mubr.msk.bf16.vlgmr.msra.gmra.mrb[20].mxu1 %vm352_vm0, %v1354_v42 }
0x12f6   : > { %1939 = vmatprep.mubr.msk.f32.mxu1 %vm2067_vm1, %v2066_v15 }
0x13c8   : > { %v1408_v47 = vpop.f32.mrb[20].mxu1 }
0x13c9   : > { %v1409_v48 = vadd.f32 %v1408_v47, %v1358_v45  ;;  %v1921_v50 = vpop.f32.mrb[21].mxu1 }
0x13ca   : > { %v1411_v51 = vpop.f32.mrb[22].mxu1 }
0x13cb   : > { %v1415_v52 = vmul.f32 %v1409_v48, %v1409_v48  ;;  %v1412_v53 = vadd.f32 %v1411_v51, %v1358_v45  ;;  %v1922_v54 = vpop.f32.mrb[23].mxu1  ;;  %v348_v51 = vld [vmem:[%s336_s18] sm:$0x3] }
0x13cd   : > { %v1417_v55 = vmul.f32 %v1415_v52, %v1409_v48  ;;  %v1416_v26 = vmul.f32 %v1412_v53, %v1412_v53 }
0x13cf   : > { %v1419_v58 = vmul.f32 0.044715, %v1417_v55  ;;  %v1418_v15 = vmul.f32 %v1416_v26, %v1412_v53 }
0x13d1   : > { %v1421_v59 = vadd.f32 %v1419_v58, %v1409_v48  ;;  %v1420_v60 = vmul.f32 0.044715, %v1418_v15 }
0x13d3   : > { %v1423_v56 = vmul.f32 0.7978846, %v1421_v59  ;;  %v1422_v57 = vadd.f32 %v1420_v60, %v1412_v53 }
0x13d5   : > { %2046 = vtanh.f32 %v1423_v56  ;;  %v1424_v63 = vmul.f32 0.7978846, %v1422_v57 }
0x13d7   : > { %2048 = vtanh.f32 %v1424_v63 }
0x13df   : > { %v2047_v62 = vpop.eup %2046 }
0x13e0   : > { %v1427_v2 = vadd.f32 1.0, %v2047_v62 }
0x13e1   : > { %v2049_v61 = vpop.eup %2048 }
0x13e2   : > { %v1429_v0 = vmul.f32 0.5, %v1427_v2  ;;  %v1428_v3 = vadd.f32 1.0, %v2049_v61 }
0x13e4   : > { %v1430_v4 = vmul.f32 0.5, %v1428_v3  ;;  %v1431_v5 = vmul.f32 %v1429_v0, %v1409_v48 }
0x13e6   : > { %v1432_v6 = vmul.f32 %v1430_v4, %v1412_v53 }
0x13e8   : > { %v1433_v1 = vpack.c.bf16 %v1432_v6, %v1431_v5 }
0x13ea   : > { %1932 = vmatmul.mubr.msk.bf16.vlgmr.msra.gmra.mrb[20].mxu0 %vm883_vm3, %v1433_v1 }
0x14bd   : > { %v1499_v11 = vpop.f32.mrb[20].mxu0 }
0x14be   : > { %v1500_v12 = vadd.f32 %v1499_v11, %v1437_v7  ;;  %v1933_v10 = vpop.f32.mrb[21].mxu0 }
0x14bf   : > { %v1502_v13 = vpop.f32.mrb[22].mxu0 }
0x14c0   : > { %v1503_v8 = vadd.f32 %v1502_v13, %v1437_v7  ;;  %v1934_v14 = vpop.f32.mrb[23].mxu0  ;;  %v1506_v16 = vadd.f32 %v1500_v12, %v1352_v40  ;;  %v1537_v40 = vrot.slane %v351_v39, %v2149_v25 }
0x14c2   : > { %v1508_v17 = vsel %vm352_vm0, %v1506_v16, 0.0  ;;  %v1507_v20 = vadd.f32 %v1503_v8, %v1353_v41 }
0x14c3   : > { %1509 = vadd.xlane.f32.xlu0 %v1508_v17 }
0x14c4   : > { %v1511_v21 = vsel %vm352_vm0, %v1507_v20, 0.0 }
0x14c5   : > { %1512 = vadd.xlane.f32.xlu1 %v1511_v21 }
0x1550   : > { %v1510_v18 = vpop.xlane.xlu0 %1509 }
0x1551   : > { %v1514_v19 = vmul.f32 0.03125, %v1510_v18 }
0x1552   : > { %v1513_v22 = vpop.xlane.xlu1 %1512 }
0x1553   : > { %v1516_v24 = vsub.f32 %v1506_v16, %v1514_v19  ;;  %v1515_v23 = vmul.f32 0.03125, %v1513_v22 }
0x1555   : > { %v1517_v36 = vsub.f32 %v1507_v20, %v1515_v23  ;;  %v1518_v9 = vmul.f32 %v1516_v24, %v1516_v24 }
0x1557   : > { %v1520_v27 = vsel %vm352_vm0, %v1518_v9, 0.0  ;;  %v1519_v28 = vmul.f32 %v1517_v36, %v1517_v36 }
0x1558   : > { %1521 = vadd.xlane.f32.xlu0 %v1520_v27 }
0x1559   : > { %v1523_v29 = vsel %vm352_vm0, %v1519_v28, 0.0 }
0x155a   : > { %1524 = vadd.xlane.f32.xlu1 %v1523_v29 }
0x15e5   : > { %v1522_v32 = vpop.xlane.xlu0 %1521 }
0x15e6   : > { %v1526_v33 = vmul.f32 0.03125, %v1522_v32 }
0x15e7   : > { %v1525_v34 = vpop.xlane.xlu1 %1524 }
0x15e8   : > { %v1528_v35 = vadd.f32 1e-12, %v1526_v33  ;;  %v1527_v37 = vmul.f32 0.03125, %v1525_v34 }
0x15ea   : > { %2050 = vrsqrt.f32 %v1528_v35  ;;  %v1529_v38 = vadd.f32 1e-12, %v1527_v37 }
0x15ec   : > { %2052 = vrsqrt.f32 %v1529_v38 }
0x15f4   : > { %v2051_v41 = vpop.eup %2050 }
0x15f5   : > { %v1532_v42 = vmul.f32 %v2051_v41, %v1516_v24 }
0x15f6   : > { %v2053_v46 = vpop.eup %2052 }
0x15f7   : > { %v1533_v49 = vmul.f32 %v2053_v46, %v1517_v36  ;;  %v1538_v43 = vmul.f32 %v1537_v40, %v1532_v42 }
0x15f9   : > { %v1539_v45 = vmul.f32 %v1537_v40, %v1533_v49  ;;  %v1544_v47 = vadd.f32 %v1543_v44, %v1538_v43 }
0x15fb   : > { %v1545_v48 = vadd.f32 %v1543_v44, %v1539_v45 }
0x15fd   : > { %v1943_v50 = vpack.c.bf16 %v1545_v48, %v1544_v47 }
0x15ff   : > { %1944 = vmatpush3.bf16.msra.mxu1 %v1943_v50 }
0x1602   : > { %1940 = vmatmul.mubr.msk.f32.vlgmr.msra.gmra.mrb[24].mxu1 %vm495_vm2, %v348_v51 }
0x16d5   : > { %v1615_v25 = vpop.f32.mrb[24].mxu1 }
0x16d6   : > { %v1619_v52 = vmul.f32 %v1615_v25, %v1615_v25  ;;  %v1941_v53 = vpop.f32.mrb[25].mxu1 }
0x16d8   : > { %v1621_v54 = vsel %vm1620_vm4, %v1619_v52, 0.0 }
0x16d9   : > { %1622 = vadd.xlane.f32.xlu0 %v1621_v54 }
0x1766   : > { %v1623_v30 = vpop.xlane.xlu0 %1622 }
0x1767   : > { %2054 = vrsqrt.f32 %v1623_v30  ;;  %vm1626_vm5 = vcmp.eq.f32.partialorder %v1623_v30, inf  ;;  %v1629_v58 = vand.u32 2147483648, %v1623_v30  ;;  %vm1628_vm6 = vcmp.eq.f32.partialorder %v1623_v30, 0.0 }
0x1771   : > { %v2055_v55 = vpop.eup %2054 }
0x1772   : > { %v1625_v26 = vmul.f32 %v2055_v55, %v1623_v30 }
0x1774   : > { %v1627_v15 = vsel %vm1626_vm5, %v1623_v30, %v1625_v26 }
0x1775   : > { %v1630_v59 = vsel %vm1628_vm6, %v1629_v58, %v1627_v15 }
0x1776   : > { %v1631_v60 = vmax.f32 %v1630_v59, 1e-12 }
0x1778   : > { %2056 = vrcp.f32 %v1631_v60 }
0x1782   : > { %v2057_v56 = vpop.eup %2056 }
0x1783   : > { %v1633_v57 = vmul.f32 %v2057_v56, %v1615_v25 }
0x1785   : > { %1634 = vst.msk [vmem:[%s340_s11] sm:$0x3] %vm1620_vm4, %v1633_v57 }
0x1786 PF: > { %s18_s27 = sadd.s32 1, %s2064_s27  }
0x1787   : > { %p15_p4 = scmp.ge.s32.totalorder %s18_s27, 4  }
0x1789   :  { %17 = sbr.rel (!%p15_p4) target bundleno = 1 (0x1), region = 92 }

</bundles_post_ra>
